<compile_context>
chip_gen: v7x
topology: tpu7x:2x2x1
jax: 0.10.0
libtpu: 0.0.40
codegen_flags: <defaults>
</compile_context>

<pallas_src>
import jax
import jax.numpy as jnp
from jax.experimental import pallas as pl
from jax.experimental.pallas import tpu as pltpu

_NEG_SLOPE = 0.01  # F.leaky_relu default


def _leaky_relu(h):
    return jnp.where(h >= 0.0, h, _NEG_SLOPE * h)


def _decoder_kernel(x_ref,
                    w2_ref, b2_ref,
                    mu3w_ref, mu3b_ref, dw3_ref, db3_ref, si3_ref, so3_ref,
                    mu4w_ref, mu4b_ref, dw4_ref, db4_ref, si4_ref, so4_ref,
                    mu5w_ref, mu5b_ref, dw5_ref, db5_ref, si5_ref, so5_ref,
                    state_ref, mean_ref):
    nb, k, dim_x = x_ref.shape
    tm = nb * k
    f32 = jnp.float32
    bf16 = jnp.bfloat16

    # (Nb, K, dim_x) -> (Nb*K, dim_x); leading-dim collapse only, lanes untouched.
    x = x_ref[...].reshape(tm, dim_x)                                   # bf16

    # fc2: dense + leaky_relu (bf16 MXU operands, f32 accumulation).
    h = jnp.dot(x, w2_ref[...], preferred_element_type=f32) + b2_ref[...]
    h = _leaky_relu(h)

    def flipout(h, muw_ref, mub_ref, dw_ref, db_ref, si_ref, so_ref):
        # bayesian-torch LinearFlipout forward:
        #   out  = h @ mu_W + mu_b
        #   out += ((h * sign_in) @ (softplus(rho_W)*eps_W) + softplus(rho_b)*eps_b) * sign_out
        hb = h.astype(bf16)
        out = jnp.dot(hb, muw_ref[...], preferred_element_type=f32) + mub_ref[...]
        si = si_ref[...].astype(f32).reshape(tm, -1)                    # int8 -> f32 (+-1)
        so = so_ref[...].astype(f32).reshape(tm, -1)
        pert = jnp.dot((h * si).astype(bf16), dw_ref[...],
                       preferred_element_type=f32) + db_ref[...]
        return out + pert * so

    h = _leaky_relu(flipout(h, mu3w_ref, mu3b_ref, dw3_ref, db3_ref, si3_ref, so3_ref))
    h = _leaky_relu(flipout(h, mu4w_ref, mu4b_ref, dw4_ref, db4_ref, si4_ref, so4_ref))
    state = flipout(h, mu5w_ref, mu5b_ref, dw5_ref, db5_ref, si5_ref, so5_ref)  # (TM, Hp)

    state3 = state.reshape(nb, k, state.shape[-1])
    state_ref[...] = state3
    # exact per-batch ensemble mean (f32), K axis is the middle (sublane-side) axis
    mean_ref[...] = jnp.mean(state3, axis=1, keepdims=True)


def _pick_nb(bs, K):
    """Batch elements per grid step.  Targets <=1024 rows per tile and guarantees
    >= 2 grid tiles when bs > 1 (v7x megacore).  Nb > 1 only when K % 8 == 0 so the
    in-kernel leading-dim reshapes stay sublane-tile aligned."""
    max_nb = bs if bs == 1 else bs // 2
    best = 1
    for d in range(1, max_nb + 1):
        if bs % d:
            continue
        if d > 1 and K % 8:
            continue
        if d * K <= 1024:
            best = d
    return best


def decoder_forward(x, params, noise):
    """x: (bs, K, dim_x) float32.  Returns (state (bs,K,dim_gt), m_state (bs,1,dim_gt))."""
    bs, K, dim_x = x.shape
    H2 = params["w2"].shape[1]
    H3 = params["mu3_w"].shape[1]
    H4 = params["mu4_w"].shape[1]
    dim_gt = params["mu5_w"].shape[1]
    Hp = max(128, ((dim_gt + 127) // 128) * 128)     # lane-dense padded fc5 width
    M = bs * K
    f32, bf16 = jnp.float32, jnp.bfloat16

    def delta(rho, eps):                             # softplus(rho) * eps
        return jax.nn.softplus(rho) * eps

    def pad_cols(a, width):
        return jnp.pad(a, ((0, 0), (0, width - a.shape[1])))

    # fc3 / fc4 flipout delta weights (bf16 for the MXU), biases in f32
    dw3 = delta(params["rho3_w"], noise["eps3_w"]).astype(bf16)
    db3 = delta(params["rho3_b"], noise["eps3_b"]).reshape(1, -1).astype(f32)
    dw4 = delta(params["rho4_w"], noise["eps4_w"]).astype(bf16)
    db4 = delta(params["rho4_b"], noise["eps4_b"]).reshape(1, -1).astype(f32)

    # fc5 padded to Hp lanes (zeros in the padded columns -> state pad cols are 0)
    mu5w_p = pad_cols(params["mu5_w"].astype(f32), Hp).astype(bf16)
    mu5b_p = pad_cols(params["mu5_b"].reshape(1, -1).astype(f32), Hp)
    dw5_p = pad_cols(delta(params["rho5_w"], noise["eps5_w"]), Hp).astype(bf16)
    db5_p = pad_cols(delta(params["rho5_b"], noise["eps5_b"]).reshape(1, -1), Hp).astype(f32)
    so5_p = jnp.pad(noise["sign_out5"], ((0, 0), (0, 0), (0, Hp - dim_gt)),
                    constant_values=1)               # int8, pad value irrelevant

    Nb = _pick_nb(bs, K)
    n_tiles = bs // Nb

    def row_spec(feat):                              # tiled along batch dim only
        return pl.BlockSpec((Nb, K, feat), lambda n: (n, 0, 0))

    def const_spec(shape):                           # whole array, never re-DMA'd
        return pl.BlockSpec(shape, lambda n: (0,) * len(shape))

    x3 = x.astype(bf16)

    flops = 2 * M * (dim_x * H2 + 2 * H2 * H3 + 2 * H3 * H4 + 2 * H4 * Hp)
    bytes_accessed = (
        M * dim_x * 2                                           # x (bf16)
        + M * (H2 + 2 * H3 + 2 * H4 + Hp) * 1                   # int8 signs
        + 2 * (dim_x * H2 + 2 * H2 * H3 + 2 * H3 * H4 + 2 * H4 * Hp)  # bf16 weights
        + 4 * (H2 + 2 * H3 + 2 * H4 + 2 * Hp)                   # f32 biases
        + 4 * (M * Hp + bs * Hp))                               # f32 outputs
    cost = pl.CostEstimate(flops=int(flops), transcendentals=0,
                           bytes_accessed=int(bytes_accessed))

    state_p, mean_p = pl.pallas_call(
        _decoder_kernel,
        out_shape=(jax.ShapeDtypeStruct((bs, K, Hp), f32),
                   jax.ShapeDtypeStruct((bs, 1, Hp), f32)),
        grid_spec=pltpu.PrefetchScalarGridSpec(
            num_scalar_prefetch=0,
            grid=(n_tiles,),
            in_specs=[
                row_spec(dim_x),                                     # x rows
                const_spec((dim_x, H2)), const_spec((1, H2)),        # fc2 W, b
                const_spec((H2, H3)), const_spec((1, H3)),           # fc3 mu W, b
                const_spec((H2, H3)), const_spec((1, H3)),           # fc3 delta W, b
                row_spec(H2), row_spec(H3),                          # fc3 sign_in, sign_out
                const_spec((H3, H4)), const_spec((1, H4)),           # fc4 mu W, b
                const_spec((H3, H4)), const_spec((1, H4)),           # fc4 delta W, b
                row_spec(H3), row_spec(H4),                          # fc4 sign_in, sign_out
                const_spec((H4, Hp)), const_spec((1, Hp)),           # fc5 mu W, b (padded)
                const_spec((H4, Hp)), const_spec((1, Hp)),           # fc5 delta W, b (padded)
                row_spec(H4), row_spec(Hp),                          # fc5 sign_in, sign_out
            ],
            out_specs=(pl.BlockSpec((Nb, K, Hp), lambda n: (n, 0, 0)),
                       pl.BlockSpec((Nb, 1, Hp), lambda n: (n, 0, 0))),
        ),
        compiler_params=pltpu.CompilerParams(
            dimension_semantics=("parallel",),
            vmem_limit_bytes=32 * 1024 * 1024,
        ),
        cost_estimate=cost,
    )(x3,
      params["w2"].astype(bf16), params["b2"].reshape(1, -1).astype(f32),
      params["mu3_w"].astype(bf16), params["mu3_b"].reshape(1, -1).astype(f32),
      dw3, db3, noise["sign_in3"], noise["sign_out3"],
      params["mu4_w"].astype(bf16), params["mu4_b"].reshape(1, -1).astype(f32),
      dw4, db4, noise["sign_in4"], noise["sign_out4"],
      mu5w_p, mu5b_p, dw5_p, db5_p, noise["sign_in5"], so5_p)

    state = state_p[:, :, :dim_gt]
    m_state = mean_p[:, :, :dim_gt]
    return state, m_state


def ref_forward(x, params, noise):
    """Pure-JAX (f32) reference mirroring DecoderModel.forward with the same noise."""
    bs, K, dim_x = x.shape
    dim_gt = params["mu5_w"].shape[1]
    M = bs * K
    h = x.reshape(M, dim_x)

    def flip(h, mu_w, mu_b, rho_w, rho_b, eps_w, eps_b, si, so):
        dw = jax.nn.softplus(rho_w) * eps_w
        db = jax.nn.softplus(rho_b) * eps_b
        si = si.reshape(M, -1).astype(jnp.float32)
        so = so.reshape(M, -1).astype(jnp.float32)
        return (h @ mu_w + mu_b) + ((h * si) @ dw + db) * so

    h = _leaky_relu(h @ params["w2"] + params["b2"])
    h = _leaky_relu(flip(h, params["mu3_w"], params["mu3_b"], params["rho3_w"], params["rho3_b"],
                         noise["eps3_w"], noise["eps3_b"], noise["sign_in3"], noise["sign_out3"]))
    h = _leaky_relu(flip(h, params["mu4_w"], params["mu4_b"], params["rho4_w"], params["rho4_b"],
                         noise["eps4_w"], noise["eps4_b"], noise["sign_in4"], noise["sign_out4"]))
    state = flip(h, params["mu5_w"], params["mu5_b"], params["rho5_w"], params["rho5_b"],
                 noise["eps5_w"], noise["eps5_b"], noise["sign_in5"], noise["sign_out5"])
    state = state.reshape(bs, K, dim_gt)
    m_state = jnp.mean(state, axis=1, keepdims=True)
    return state, m_state


if __name__ == "__main__":
    key = jax.random.PRNGKey(0)
    bs, K, dim_x, dim_gt = 2, 8, 32, 4        # batch, num_ensemble, dim_x, dim_gt
    H2, H3, H4 = 256, 128, 32                 # fc2 / fc3 / fc4 widths from the module
    ks = iter(jax.random.split(key, 40))

    def nrm(shape, scale=0.1):
        return scale * jax.random.normal(next(ks), shape, jnp.float32)

    def sign(shape):
        u = jax.random.uniform(next(ks), shape)
        return jnp.where(u >= 0.5, 1, -1).astype(jnp.int8)

    x = jax.random.normal(next(ks), (bs, K, dim_x), jnp.float32)

    params = {
        "w2": nrm((dim_x, H2)), "b2": nrm((H2,)),
        "mu3_w": nrm((H2, H3)), "mu3_b": nrm((H3,)),
        "rho3_w": -3.0 + nrm((H2, H3)), "rho3_b": -3.0 + nrm((H3,)),
        "mu4_w": nrm((H3, H4)), "mu4_b": nrm((H4,)),
        "rho4_w": -3.0 + nrm((H3, H4)), "rho4_b": -3.0 + nrm((H4,)),
        "mu5_w": nrm((H4, dim_gt)), "mu5_b": nrm((dim_gt,)),
        "rho5_w": -3.0 + nrm((H4, dim_gt)), "rho5_b": -3.0 + nrm((dim_gt,)),
    }

    noise = {
        "eps3_w": jax.random.normal(next(ks), (H2, H3), jnp.float32),
        "eps3_b": jax.random.normal(next(ks), (H3,), jnp.float32),
        "sign_in3": sign((bs, K, H2)), "sign_out3": sign((bs, K, H3)),
        "eps4_w": jax.random.normal(next(ks), (H3, H4), jnp.float32),
        "eps4_b": jax.random.normal(next(ks), (H4,), jnp.float32),
        "sign_in4": sign((bs, K, H3)), "sign_out4": sign((bs, K, H4)),
        "eps5_w": jax.random.normal(next(ks), (H4, dim_gt), jnp.float32),
        "eps5_b": jax.random.normal(next(ks), (dim_gt,), jnp.float32),
        "sign_in5": sign((bs, K, H4)), "sign_out5": sign((bs, K, dim_gt)),
    }

    state, m_state = decoder_forward(x, params, noise)
    state = jax.block_until_ready(state)
    m_state = jax.block_until_ready(m_state)

    ref_state, ref_m = ref_forward(x, params, noise)
    assert state.shape == (bs, K, dim_gt) and m_state.shape == (bs, 1, dim_gt)

    # bf16 MXU operands with f32 accumulation -> relative tolerance ~1e-2
    scale = float(jnp.max(jnp.abs(ref_state))) + 1e-6
    err = max(float(jnp.max(jnp.abs(state - ref_state))),
              float(jnp.max(jnp.abs(m_state - ref_m)))) / scale
    if err > 3e-2:
        raise AssertionError(f"Pallas kernel mismatch vs reference: rel_err={err}")
    print("KERNEL_OK")
</pallas_src>

<mosaic_0001>
module attributes {stable_mosaic.version = 11 : i64} {
  func.func @_decoder_kernel(%arg0: i32, %arg1: memref<1x8x32xbf16, #tpu.memory_space<vmem>>, %arg2: memref<32x256xbf16, #tpu.memory_space<vmem>>, %arg3: memref<1x256xf32, #tpu.memory_space<vmem>>, %arg4: memref<256x128xbf16, #tpu.memory_space<vmem>>, %arg5: memref<1x128xf32, #tpu.memory_space<vmem>>, %arg6: memref<256x128xbf16, #tpu.memory_space<vmem>>, %arg7: memref<1x128xf32, #tpu.memory_space<vmem>>, %arg8: memref<1x8x256xi8, #tpu.memory_space<vmem>>, %arg9: memref<1x8x128xi8, #tpu.memory_space<vmem>>, %arg10: memref<128x32xbf16, #tpu.memory_space<vmem>>, %arg11: memref<1x32xf32, #tpu.memory_space<vmem>>, %arg12: memref<128x32xbf16, #tpu.memory_space<vmem>>, %arg13: memref<1x32xf32, #tpu.memory_space<vmem>>, %arg14: memref<1x8x128xi8, #tpu.memory_space<vmem>>, %arg15: memref<1x8x32xi8, #tpu.memory_space<vmem>>, %arg16: memref<32x128xbf16, #tpu.memory_space<vmem>>, %arg17: memref<1x128xf32, #tpu.memory_space<vmem>>, %arg18: memref<32x128xbf16, #tpu.memory_space<vmem>>, %arg19: memref<1x128xf32, #tpu.memory_space<vmem>>, %arg20: memref<1x8x32xi8, #tpu.memory_space<vmem>>, %arg21: memref<1x8x128xi8, #tpu.memory_space<vmem>>, %arg22: memref<1x8x128xf32, #tpu.memory_space<vmem>>, %arg23: memref<1x1x128xf32, #tpu.memory_space<vmem>>) attributes {dimension_semantics = [#tpu.dimension_semantics<parallel>], iteration_bounds = array<i64: 2>, scalar_prefetch = 0 : i64, scratch_operands = 0 : i64, tpu.core_type = #tpu.core_type<tc>, window_params = [{transform_indices = @transform_0, window_bounds = array<i64: 1, 8, 32>}, {pipeline_mode = #tpu.pipeline_mode<synchronous>, transform_indices = @transform_1, window_bounds = array<i64: 32, 256>}, {pipeline_mode = #tpu.pipeline_mode<synchronous>, transform_indices = @transform_2, window_bounds = array<i64: 1, 256>}, {pipeline_mode = #tpu.pipeline_mode<synchronous>, transform_indices = @transform_3, window_bounds = array<i64: 256, 128>}, {pipeline_mode = #tpu.pipeline_mode<synchronous>, transform_indices = @transform_4, window_bounds = array<i64: 1, 128>}, {pipeline_mode = #tpu.pipeline_mode<synchronous>, transform_indices = @transform_5, window_bounds = array<i64: 256, 128>}, {pipeline_mode = #tpu.pipeline_mode<synchronous>, transform_indices = @transform_6, window_bounds = array<i64: 1, 128>}, {transform_indices = @transform_7, window_bounds = array<i64: 1, 8, 256>}, {transform_indices = @transform_8, window_bounds = array<i64: 1, 8, 128>}, {pipeline_mode = #tpu.pipeline_mode<synchronous>, transform_indices = @transform_9, window_bounds = array<i64: 128, 32>}, {pipeline_mode = #tpu.pipeline_mode<synchronous>, transform_indices = @transform_10, window_bounds = array<i64: 1, 32>}, {pipeline_mode = #tpu.pipeline_mode<synchronous>, transform_indices = @transform_11, window_bounds = array<i64: 128, 32>}, {pipeline_mode = #tpu.pipeline_mode<synchronous>, transform_indices = @transform_12, window_bounds = array<i64: 1, 32>}, {transform_indices = @transform_13, window_bounds = array<i64: 1, 8, 128>}, {transform_indices = @transform_14, window_bounds = array<i64: 1, 8, 32>}, {pipeline_mode = #tpu.pipeline_mode<synchronous>, transform_indices = @transform_15, window_bounds = array<i64: 32, 128>}, {pipeline_mode = #tpu.pipeline_mode<synchronous>, transform_indices = @transform_16, window_bounds = array<i64: 1, 128>}, {pipeline_mode = #tpu.pipeline_mode<synchronous>, transform_indices = @transform_17, window_bounds = array<i64: 32, 128>}, {pipeline_mode = #tpu.pipeline_mode<synchronous>, transform_indices = @transform_18, window_bounds = array<i64: 1, 128>}, {transform_indices = @transform_19, window_bounds = array<i64: 1, 8, 32>}, {transform_indices = @transform_20, window_bounds = array<i64: 1, 8, 128>}, {transform_indices = @transform_21, window_bounds = array<i64: 1, 8, 128>}, {transform_indices = @transform_22, window_bounds = array<i64: 1, 1, 128>}]} {
    %c0 = arith.constant 0 : index
    %c0_0 = arith.constant 0 : index
    %c0_1 = arith.constant 0 : index
    %0 = vector.load %arg1[%c0, %c0_0, %c0_1] : memref<1x8x32xbf16, #tpu.memory_space<vmem>>, vector<1x8x32xbf16>
    %1 = vector.shape_cast %0 : vector<1x8x32xbf16> to vector<8x32xbf16>
    %c0_2 = arith.constant 0 : index
    %c0_3 = arith.constant 0 : index
    %2 = vector.load %arg2[%c0_2, %c0_3] : memref<32x256xbf16, #tpu.memory_space<vmem>>, vector<32x256xbf16>
    %cst = arith.constant dense<0.000000e+00> : vector<8x256xf32>
    %3 = tpu.matmul %1, %2, %cst {dimension_numbers = #tpu.dot_dimension_numbers<[1], [0], [0], [1], [0, 0, 1, 1], [], []>} : vector<8x32xbf16>, vector<32x256xbf16>, vector<8x256xf32> -> vector<8x256xf32>
    %c0_4 = arith.constant 0 : index
    %c0_5 = arith.constant 0 : index
    %4 = vector.load %arg3[%c0_4, %c0_5] : memref<1x256xf32, #tpu.memory_space<vmem>>, vector<1x256xf32>
    %5 = vector.broadcast %4 : vector<1x256xf32> to vector<8x256xf32>
    %6 = arith.addf %3, %5 : vector<8x256xf32>
    %cst_6 = arith.constant 0.000000e+00 : f32
    %7 = vector.broadcast %cst_6 : f32 to vector<8x256xf32>
    %8 = arith.cmpf oge, %6, %7 : vector<8x256xf32>
    %cst_7 = arith.constant 0.00999999977 : f32
    %9 = vector.broadcast %cst_7 : f32 to vector<8x256xf32>
    %10 = arith.mulf %9, %6 : vector<8x256xf32>
    %11 = arith.select %8, %6, %10 : vector<8x256xi1>, vector<8x256xf32>
    %12 = arith.truncf %11 : vector<8x256xf32> to vector<8x256xbf16>
    %c0_8 = arith.constant 0 : index
    %c0_9 = arith.constant 0 : index
    %13 = vector.load %arg4[%c0_8, %c0_9] : memref<256x128xbf16, #tpu.memory_space<vmem>>, vector<256x128xbf16>
    %cst_10 = arith.constant dense<0.000000e+00> : vector<8x128xf32>
    %14 = tpu.matmul %12, %13, %cst_10 {dimension_numbers = #tpu.dot_dimension_numbers<[1], [0], [0], [1], [0, 0, 1, 1], [], []>} : vector<8x256xbf16>, vector<256x128xbf16>, vector<8x128xf32> -> vector<8x128xf32>
    %c0_11 = arith.constant 0 : index
    %c0_12 = arith.constant 0 : index
    %15 = vector.load %arg5[%c0_11, %c0_12] : memref<1x128xf32, #tpu.memory_space<vmem>>, vector<1x128xf32>
    %16 = vector.broadcast %15 : vector<1x128xf32> to vector<8x128xf32>
    %17 = arith.addf %14, %16 : vector<8x128xf32>
    %c0_13 = arith.constant 0 : index
    %c0_14 = arith.constant 0 : index
    %c0_15 = arith.constant 0 : index
    %18 = vector.load %arg8[%c0_13, %c0_14, %c0_15] : memref<1x8x256xi8, #tpu.memory_space<vmem>>, vector<1x8x256xi8>
    %19 = arith.sitofp %18 : vector<1x8x256xi8> to vector<1x8x256xf32>
    %20 = vector.shape_cast %19 : vector<1x8x256xf32> to vector<8x256xf32>
    %c0_16 = arith.constant 0 : index
    %c0_17 = arith.constant 0 : index
    %c0_18 = arith.constant 0 : index
    %21 = vector.load %arg9[%c0_16, %c0_17, %c0_18] : memref<1x8x128xi8, #tpu.memory_space<vmem>>, vector<1x8x128xi8>
    %22 = arith.sitofp %21 : vector<1x8x128xi8> to vector<1x8x128xf32>
    %23 = vector.shape_cast %22 : vector<1x8x128xf32> to vector<8x128xf32>
    %24 = arith.mulf %11, %20 : vector<8x256xf32>
    %25 = arith.truncf %24 : vector<8x256xf32> to vector<8x256xbf16>
    %c0_19 = arith.constant 0 : index
    %c0_20 = arith.constant 0 : index
    %26 = vector.load %arg6[%c0_19, %c0_20] : memref<256x128xbf16, #tpu.memory_space<vmem>>, vector<256x128xbf16>
    %cst_21 = arith.constant dense<0.000000e+00> : vector<8x128xf32>
    %27 = tpu.matmul %25, %26, %cst_21 {dimension_numbers = #tpu.dot_dimension_numbers<[1], [0], [0], [1], [0, 0, 1, 1], [], []>} : vector<8x256xbf16>, vector<256x128xbf16>, vector<8x128xf32> -> vector<8x128xf32>
    %c0_22 = arith.constant 0 : index
    %c0_23 = arith.constant 0 : index
    %28 = vector.load %arg7[%c0_22, %c0_23] : memref<1x128xf32, #tpu.memory_space<vmem>>, vector<1x128xf32>
    %29 = vector.broadcast %28 : vector<1x128xf32> to vector<8x128xf32>
    %30 = arith.addf %27, %29 : vector<8x128xf32>
    %31 = arith.mulf %30, %23 : vector<8x128xf32>
    %32 = arith.addf %17, %31 : vector<8x128xf32>
    %cst_24 = arith.constant 0.000000e+00 : f32
    %33 = vector.broadcast %cst_24 : f32 to vector<8x128xf32>
    %34 = arith.cmpf oge, %32, %33 : vector<8x128xf32>
    %cst_25 = arith.constant 0.00999999977 : f32
    %35 = vector.broadcast %cst_25 : f32 to vector<8x128xf32>
    %36 = arith.mulf %35, %32 : vector<8x128xf32>
    %37 = arith.select %34, %32, %36 : vector<8x128xi1>, vector<8x128xf32>
    %38 = arith.truncf %37 : vector<8x128xf32> to vector<8x128xbf16>
    %c0_26 = arith.constant 0 : index
    %c0_27 = arith.constant 0 : index
    %39 = vector.load %arg10[%c0_26, %c0_27] : memref<128x32xbf16, #tpu.memory_space<vmem>>, vector<128x32xbf16>
    %cst_28 = arith.constant dense<0.000000e+00> : vector<8x32xf32>
    %40 = tpu.matmul %38, %39, %cst_28 {dimension_numbers = #tpu.dot_dimension_numbers<[1], [0], [0], [1], [0, 0, 1, 1], [], []>} : vector<8x128xbf16>, vector<128x32xbf16>, vector<8x32xf32> -> vector<8x32xf32>
    %c0_29 = arith.constant 0 : index
    %c0_30 = arith.constant 0 : index
    %41 = vector.load %arg11[%c0_29, %c0_30] : memref<1x32xf32, #tpu.memory_space<vmem>>, vector<1x32xf32>
    %42 = vector.broadcast %41 : vector<1x32xf32> to vector<8x32xf32>
    %43 = arith.addf %40, %42 : vector<8x32xf32>
    %c0_31 = arith.constant 0 : index
    %c0_32 = arith.constant 0 : index
    %c0_33 = arith.constant 0 : index
    %44 = vector.load %arg14[%c0_31, %c0_32, %c0_33] : memref<1x8x128xi8, #tpu.memory_space<vmem>>, vector<1x8x128xi8>
    %45 = arith.sitofp %44 : vector<1x8x128xi8> to vector<1x8x128xf32>
    %46 = vector.shape_cast %45 : vector<1x8x128xf32> to vector<8x128xf32>
    %c0_34 = arith.constant 0 : index
    %c0_35 = arith.constant 0 : index
    %c0_36 = arith.constant 0 : index
    %47 = vector.load %arg15[%c0_34, %c0_35, %c0_36] : memref<1x8x32xi8, #tpu.memory_space<vmem>>, vector<1x8x32xi8>
    %48 = arith.sitofp %47 : vector<1x8x32xi8> to vector<1x8x32xf32>
    %49 = vector.shape_cast %48 : vector<1x8x32xf32> to vector<8x32xf32>
    %50 = arith.mulf %37, %46 : vector<8x128xf32>
    %51 = arith.truncf %50 : vector<8x128xf32> to vector<8x128xbf16>
    %c0_37 = arith.constant 0 : index
    %c0_38 = arith.constant 0 : index
    %52 = vector.load %arg12[%c0_37, %c0_38] : memref<128x32xbf16, #tpu.memory_space<vmem>>, vector<128x32xbf16>
    %cst_39 = arith.constant dense<0.000000e+00> : vector<8x32xf32>
    %53 = tpu.matmul %51, %52, %cst_39 {dimension_numbers = #tpu.dot_dimension_numbers<[1], [0], [0], [1], [0, 0, 1, 1], [], []>} : vector<8x128xbf16>, vector<128x32xbf16>, vector<8x32xf32> -> vector<8x32xf32>
    %c0_40 = arith.constant 0 : index
    %c0_41 = arith.constant 0 : index
    %54 = vector.load %arg13[%c0_40, %c0_41] : memref<1x32xf32, #tpu.memory_space<vmem>>, vector<1x32xf32>
    %55 = vector.broadcast %54 : vector<1x32xf32> to vector<8x32xf32>
    %56 = arith.addf %53, %55 : vector<8x32xf32>
    %57 = arith.mulf %56, %49 : vector<8x32xf32>
    %58 = arith.addf %43, %57 : vector<8x32xf32>
    %cst_42 = arith.constant 0.000000e+00 : f32
    %59 = vector.broadcast %cst_42 : f32 to vector<8x32xf32>
    %60 = arith.cmpf oge, %58, %59 : vector<8x32xf32>
    %cst_43 = arith.constant 0.00999999977 : f32
    %61 = vector.broadcast %cst_43 : f32 to vector<8x32xf32>
    %62 = arith.mulf %61, %58 : vector<8x32xf32>
    %63 = arith.select %60, %58, %62 : vector<8x32xi1>, vector<8x32xf32>
    %64 = arith.truncf %63 : vector<8x32xf32> to vector<8x32xbf16>
    %c0_44 = arith.constant 0 : index
    %c0_45 = arith.constant 0 : index
    %65 = vector.load %arg16[%c0_44, %c0_45] : memref<32x128xbf16, #tpu.memory_space<vmem>>, vector<32x128xbf16>
    %cst_46 = arith.constant dense<0.000000e+00> : vector<8x128xf32>
    %66 = tpu.matmul %64, %65, %cst_46 {dimension_numbers = #tpu.dot_dimension_numbers<[1], [0], [0], [1], [0, 0, 1, 1], [], []>} : vector<8x32xbf16>, vector<32x128xbf16>, vector<8x128xf32> -> vector<8x128xf32>
    %c0_47 = arith.constant 0 : index
    %c0_48 = arith.constant 0 : index
    %67 = vector.load %arg17[%c0_47, %c0_48] : memref<1x128xf32, #tpu.memory_space<vmem>>, vector<1x128xf32>
    %68 = vector.broadcast %67 : vector<1x128xf32> to vector<8x128xf32>
    %69 = arith.addf %66, %68 : vector<8x128xf32>
    %c0_49 = arith.constant 0 : index
    %c0_50 = arith.constant 0 : index
    %c0_51 = arith.constant 0 : index
    %70 = vector.load %arg20[%c0_49, %c0_50, %c0_51] : memref<1x8x32xi8, #tpu.memory_space<vmem>>, vector<1x8x32xi8>
    %71 = arith.sitofp %70 : vector<1x8x32xi8> to vector<1x8x32xf32>
    %72 = vector.shape_cast %71 : vector<1x8x32xf32> to vector<8x32xf32>
    %c0_52 = arith.constant 0 : index
    %c0_53 = arith.constant 0 : index
    %c0_54 = arith.constant 0 : index
    %73 = vector.load %arg21[%c0_52, %c0_53, %c0_54] : memref<1x8x128xi8, #tpu.memory_space<vmem>>, vector<1x8x128xi8>
    %74 = arith.sitofp %73 : vector<1x8x128xi8> to vector<1x8x128xf32>
    %75 = vector.shape_cast %74 : vector<1x8x128xf32> to vector<8x128xf32>
    %76 = arith.mulf %63, %72 : vector<8x32xf32>
    %77 = arith.truncf %76 : vector<8x32xf32> to vector<8x32xbf16>
    %c0_55 = arith.constant 0 : index
    %c0_56 = arith.constant 0 : index
    %78 = vector.load %arg18[%c0_55, %c0_56] : memref<32x128xbf16, #tpu.memory_space<vmem>>, vector<32x128xbf16>
    %cst_57 = arith.constant dense<0.000000e+00> : vector<8x128xf32>
    %79 = tpu.matmul %77, %78, %cst_57 {dimension_numbers = #tpu.dot_dimension_numbers<[1], [0], [0], [1], [0, 0, 1, 1], [], []>} : vector<8x32xbf16>, vector<32x128xbf16>, vector<8x128xf32> -> vector<8x128xf32>
    %c0_58 = arith.constant 0 : index
    %c0_59 = arith.constant 0 : index
    %80 = vector.load %arg19[%c0_58, %c0_59] : memref<1x128xf32, #tpu.memory_space<vmem>>, vector<1x128xf32>
    %81 = vector.broadcast %80 : vector<1x128xf32> to vector<8x128xf32>
    %82 = arith.addf %79, %81 : vector<8x128xf32>
    %83 = arith.mulf %82, %75 : vector<8x128xf32>
    %84 = arith.addf %69, %83 : vector<8x128xf32>
    %85 = vector.shape_cast %84 : vector<8x128xf32> to vector<1x8x128xf32>
    %c0_60 = arith.constant 0 : index
    %c0_61 = arith.constant 0 : index
    %c0_62 = arith.constant 0 : index
    %86 = vector.load %arg22[%c0_60, %c0_61, %c0_62] : memref<1x8x128xf32, #tpu.memory_space<vmem>>, vector<1x8x128xf32>
    tpu.vector_store %arg22[%c0_60, %c0_61, %c0_62], %85 {strides = array<i32>} : memref<1x8x128xf32, #tpu.memory_space<vmem>>, vector<1x8x128xf32>,
    %cst_63 = arith.constant dense<0.000000e+00> : vector<1x128xf32>
    %87 = vector.multi_reduction <add>, %85, %cst_63 [1] : vector<1x8x128xf32> to vector<1x128xf32>
    %88 = vector.shape_cast %87 : vector<1x128xf32> to vector<1x1x128xf32>
    %cst_64 = arith.constant 8.000000e+00 : f32
    %89 = vector.broadcast %cst_64 : f32 to vector<1x1x128xf32>
    %90 = arith.divf %88, %89 : vector<1x1x128xf32>
    %c0_65 = arith.constant 0 : index
    %c0_66 = arith.constant 0 : index
    %c0_67 = arith.constant 0 : index
    %91 = vector.load %arg23[%c0_65, %c0_66, %c0_67] : memref<1x1x128xf32, #tpu.memory_space<vmem>>, vector<1x1x128xf32>
    tpu.vector_store %arg23[%c0_65, %c0_66, %c0_67], %90 {strides = array<i32>} : memref<1x1x128xf32, #tpu.memory_space<vmem>>, vector<1x1x128xf32>,
    return
  }
  func.func @transform_0(%arg0: i32) -> (i32, i32, i32) {
    %c0_i32 = arith.constant 0 : i32
    %c0_i32_0 = arith.constant 0 : i32
    %c0_i32_1 = arith.constant 0 : i32
    return %arg0, %c0_i32, %c0_i32_0 : i32, i32, i32
  }
  func.func @transform_1(%arg0: i32) -> (i32, i32) {
    %c0_i32 = arith.constant 0 : i32
    %c0_i32_0 = arith.constant 0 : i32
    %c0_i32_1 = arith.constant 0 : i32
    return %c0_i32, %c0_i32_0 : i32, i32
  }
  func.func @transform_2(%arg0: i32) -> (i32, i32) {
    %c0_i32 = arith.constant 0 : i32
    %c0_i32_0 = arith.constant 0 : i32
    %c0_i32_1 = arith.constant 0 : i32
    return %c0_i32, %c0_i32_0 : i32, i32
  }
  func.func @transform_3(%arg0: i32) -> (i32, i32) {
    %c0_i32 = arith.constant 0 : i32
    %c0_i32_0 = arith.constant 0 : i32
    %c0_i32_1 = arith.constant 0 : i32
    return %c0_i32, %c0_i32_0 : i32, i32
  }
  func.func @transform_4(%arg0: i32) -> (i32, i32) {
    %c0_i32 = arith.constant 0 : i32
    %c0_i32_0 = arith.constant 0 : i32
    %c0_i32_1 = arith.constant 0 : i32
    return %c0_i32, %c0_i32_0 : i32, i32
  }
  func.func @transform_5(%arg0: i32) -> (i32, i32) {
    %c0_i32 = arith.constant 0 : i32
    %c0_i32_0 = arith.constant 0 : i32
    %c0_i32_1 = arith.constant 0 : i32
    return %c0_i32, %c0_i32_0 : i32, i32
  }
  func.func @transform_6(%arg0: i32) -> (i32, i32) {
    %c0_i32 = arith.constant 0 : i32
    %c0_i32_0 = arith.constant 0 : i32
    %c0_i32_1 = arith.constant 0 : i32
    return %c0_i32, %c0_i32_0 : i32, i32
  }
  func.func @transform_7(%arg0: i32) -> (i32, i32, i32) {
    %c0_i32 = arith.constant 0 : i32
    %c0_i32_0 = arith.constant 0 : i32
    %c0_i32_1 = arith.constant 0 : i32
    return %arg0, %c0_i32, %c0_i32_0 : i32, i32, i32
  }
  func.func @transform_8(%arg0: i32) -> (i32, i32, i32) {
    %c0_i32 = arith.constant 0 : i32
    %c0_i32_0 = arith.constant 0 : i32
    %c0_i32_1 = arith.constant 0 : i32
    return %arg0, %c0_i32, %c0_i32_0 : i32, i32, i32
  }
  func.func @transform_9(%arg0: i32) -> (i32, i32) {
    %c0_i32 = arith.constant 0 : i32
    %c0_i32_0 = arith.constant 0 : i32
    %c0_i32_1 = arith.constant 0 : i32
    return %c0_i32, %c0_i32_0 : i32, i32
  }
  func.func @transform_10(%arg0: i32) -> (i32, i32) {
    %c0_i32 = arith.constant 0 : i32
    %c0_i32_0 = arith.constant 0 : i32
    %c0_i32_1 = arith.constant 0 : i32
    return %c0_i32, %c0_i32_0 : i32, i32
  }
  func.func @transform_11(%arg0: i32) -> (i32, i32) {
    %c0_i32 = arith.constant 0 : i32
    %c0_i32_0 = arith.constant 0 : i32
    %c0_i32_1 = arith.constant 0 : i32
    return %c0_i32, %c0_i32_0 : i32, i32
  }
  func.func @transform_12(%arg0: i32) -> (i32, i32) {
    %c0_i32 = arith.constant 0 : i32
    %c0_i32_0 = arith.constant 0 : i32
    %c0_i32_1 = arith.constant 0 : i32
    return %c0_i32, %c0_i32_0 : i32, i32
  }
  func.func @transform_13(%arg0: i32) -> (i32, i32, i32) {
    %c0_i32 = arith.constant 0 : i32
    %c0_i32_0 = arith.constant 0 : i32
    %c0_i32_1 = arith.constant 0 : i32
    return %arg0, %c0_i32, %c0_i32_0 : i32, i32, i32
  }
  func.func @transform_14(%arg0: i32) -> (i32, i32, i32) {
    %c0_i32 = arith.constant 0 : i32
    %c0_i32_0 = arith.constant 0 : i32
    %c0_i32_1 = arith.constant 0 : i32
    return %arg0, %c0_i32, %c0_i32_0 : i32, i32, i32
  }
  func.func @transform_15(%arg0: i32) -> (i32, i32) {
    %c0_i32 = arith.constant 0 : i32
    %c0_i32_0 = arith.constant 0 : i32
    %c0_i32_1 = arith.constant 0 : i32
    return %c0_i32, %c0_i32_0 : i32, i32
  }
  func.func @transform_16(%arg0: i32) -> (i32, i32) {
    %c0_i32 = arith.constant 0 : i32
    %c0_i32_0 = arith.constant 0 : i32
    %c0_i32_1 = arith.constant 0 : i32
    return %c0_i32, %c0_i32_0 : i32, i32
  }
  func.func @transform_17(%arg0: i32) -> (i32, i32) {
    %c0_i32 = arith.constant 0 : i32
    %c0_i32_0 = arith.constant 0 : i32
    %c0_i32_1 = arith.constant 0 : i32
    return %c0_i32, %c0_i32_0 : i32, i32
  }
  func.func @transform_18(%arg0: i32) -> (i32, i32) {
    %c0_i32 = arith.constant 0 : i32
    %c0_i32_0 = arith.constant 0 : i32
    %c0_i32_1 = arith.constant 0 : i32
    return %c0_i32, %c0_i32_0 : i32, i32
  }
  func.func @transform_19(%arg0: i32) -> (i32, i32, i32) {
    %c0_i32 = arith.constant 0 : i32
    %c0_i32_0 = arith.constant 0 : i32
    %c0_i32_1 = arith.constant 0 : i32
    return %arg0, %c0_i32, %c0_i32_0 : i32, i32, i32
  }
  func.func @transform_20(%arg0: i32) -> (i32, i32, i32) {
    %c0_i32 = arith.constant 0 : i32
    %c0_i32_0 = arith.constant 0 : i32
    %c0_i32_1 = arith.constant 0 : i32
    return %arg0, %c0_i32, %c0_i32_0 : i32, i32, i32
  }
  func.func @transform_21(%arg0: i32) -> (i32, i32, i32) {
    %c0_i32 = arith.constant 0 : i32
    %c0_i32_0 = arith.constant 0 : i32
    %c0_i32_1 = arith.constant 0 : i32
    return %arg0, %c0_i32, %c0_i32_0 : i32, i32, i32
  }
  func.func @transform_22(%arg0: i32) -> (i32, i32, i32) {
    %c0_i32 = arith.constant 0 : i32
    %c0_i32_0 = arith.constant 0 : i32
    %c0_i32_1 = arith.constant 0 : i32
    return %arg0, %c0_i32, %c0_i32_0 : i32, i32, i32
  }
}

</mosaic_0001>

<bundles_post_ra>
// kernel: tpu_custom_call.1
= control target key start
LH: loop header
LB: loop body
LE: loop exit
PB: predicated region body
PF: predicated region fallthrough
CT: control target
= control target key end

     0   :  { %s3938_s0 = inlined_call_operand.hbm [shape: bf16[2,8,32], index: 0, kind: input, shape index: {}]   ;;  %s3939_s1 = inlined_call_operand.vmem [shape: bf16[32,256], index: 1, kind: input, shape index: {}]   ;;  %s3940_s2 = inlined_call_operand.hbm [shape: f32[1,256], index: 2, kind: input, shape index: {}]   ;;  %s3941_s3 = inlined_call_operand.vmem [shape: bf16[256,128], index: 3, kind: input, shape index: {}]   ;;  %s3942_s4 = inlined_call_operand.hbm [shape: f32[1,128], index: 4, kind: input, shape index: {}]   ;;  %s3943_s5 = inlined_call_operand.hbm [shape: bf16[256,128], index: 5, kind: input, shape index: {}]   ;;  %s3944_s6 = inlined_call_operand.hbm [shape: f32[1,128], index: 6, kind: input, shape index: {}]   ;;  %s3945_s7 = inlined_call_operand.hbm [shape: s8[2,8,256], index: 7, kind: input, shape index: {}]   ;;  %s3946_s8 = inlined_call_operand.hbm [shape: s8[2,8,128], index: 8, kind: input, shape index: {}]   ;;  %s3947_s9 = inlined_call_operand.vmem [shape: bf16[128,32], index: 9, kind: input, shape index: {}]   ;;  %s3948_s10 = inlined_call_operand.hbm [shape: f32[1,32], index: 10, kind: input, shape index: {}]   ;;  %s3949_s11 = inlined_call_operand.vmem [shape: bf16[128,32], index: 11, kind: input, shape index: {}]   ;;  %s3950_s12 = inlined_call_operand.hbm [shape: f32[1,32], index: 12, kind: input, shape index: {}]   ;;  %s3951_s13 = inlined_call_operand.hbm [shape: s8[2,8,128], index: 13, kind: input, shape index: {}]   ;;  %s3952_s14 = inlined_call_operand.hbm [shape: s8[2,8,32], index: 14, kind: input, shape index: {}]   ;;  %s3953_s15 = inlined_call_operand.vmem [shape: bf16[32,128], index: 15, kind: input, shape index: {}]   ;;  %s3954_s16 = inlined_call_operand.hbm [shape: f32[1,128], index: 16, kind: input, shape index: {}]   ;;  %s3955_s17 = inlined_call_operand.vmem [shape: bf16[32,128], index: 17, kind: input, shape index: {}]   ;;  %s3956_s18 = inlined_call_operand.hbm [shape: f32[1,128], index: 18, kind: input, shape index: {}]   ;;  %s3957_s19 = inlined_call_operand.vmem [shape: s8[2,8,32], index: 19, kind: input, shape index: {}]   ;;  %s3958_s20 = inlined_call_operand.vmem [shape: s8[2,8,128], index: 20, kind: input, shape index: {}]   ;;  %s3959_s21 = inlined_call_operand.hbm [shape: f32[2,8,128], index: 21, kind: output, shape index: {0}]   ;;  %s3960_s22 = inlined_call_operand.hbm [shape: f32[2,1,128], index: 22, kind: output, shape index: {1}]  }
   0x1   :  { %4001 = sst [smem:[#allocation42_spill]] %s3938_s0 }
   0x2   :  { %4002 = sst [smem:[#allocation43_spill]] %s3939_s1 }
   0x3   :  { %4003 = sst [smem:[#allocation44_spill]] %s3940_s2 }
   0x4   :  { %4004 = sst [smem:[#allocation45_spill]] %s3941_s3 }
   0x5   :  { %4005 = sst [smem:[#allocation46_spill]] %s3942_s4 }
   0x6   :  { %4006 = sst [smem:[#allocation47_spill]] %s3943_s5 }
   0x7   :  { %4007 = sst [smem:[#allocation48_spill]] %s3944_s6 }
   0x8   :  { %4008 = sst [smem:[#allocation49_spill]] %s3945_s7 }
   0x9   :  { %4009 = sst [smem:[#allocation50_spill]] %s3947_s9 }
   0xa   :  { %4010 = sst [smem:[#allocation51_spill]] %s3948_s10 }
   0xb   :  { %4011 = sst [smem:[#allocation52_spill]] %s3949_s11 }
   0xc   :  { %4012 = sst [smem:[#allocation53_spill]] %s3951_s13 }
   0xd   :  { %4013 = sst [smem:[#allocation54_spill]] %s3953_s15 }
   0xe   :  { %4014 = sst [smem:[#allocation55_spill]] %s3954_s16 }
   0xf   :  { %4015 = sst [smem:[#allocation56_spill]] %s3955_s17 }
  0x10   :  { %4016 = sst [smem:[#allocation57_spill]] %s3957_s19 }
  0x11   :  { %4017 = sst [smem:[#allocation58_spill]] %s3958_s20 }
  0x12   :  { %4018 = sst [smem:[#allocation59_spill]] %s3959_s21 }
  0x13   :  { %4019 = sst [smem:[#allocation60_spill]] %s3960_s22 }
  0x14   :  { %28 = vsyncpa [#allocation3], 0 }
  0x15   :  { %30 = vsyncpa [#allocation3 + $0x1], 0 }
  0x16   :  { %31 = vsyncpa [#allocation6], 0 }
  0x17   :  { %32 = vsyncpa [#allocation9], 0 }
  0x18   :  { %33 = vsyncpa [#allocation12], 0 }
  0x19   :  { %35 = vsyncpa [#allocation12 + $0x1], 0 }
  0x1a   :  { %36 = vsyncpa [#allocation15], 0 }
  0x1b   :  { %37 = vsyncpa [#allocation18], 0 }
  0x1c   :  { %39 = vsyncpa [#allocation18 + $0x1], 0 }
  0x1d   :  { %40 = vsyncpa [#allocation21], 0 }
  0x1e   :  { %41 = vsyncpa [#allocation4], 0 }
  0x1f   :  { %43 = vsyncpa [#allocation4 + $0x1], 0 }
  0x20   :  { %44 = vsyncpa [#allocation25], 0 }
  0x21   :  { %46 = vsyncpa [#allocation25 + $0x1], 0  ;;  %s3232_s3 = smov 0   ;;  %s3234_s28 = smov 0  }
  0x22   :  { %s3236_s29 = smov 0   ;;  %s3238_s30 = smov 0  }
  0x23 LB: > { %4020 = sst [smem:[#allocation35_spill]] %s3083_s3  ;;  %s3097_s4 = smov [#allocation5]   ;;  %s3095_s30 = sphi %s3238_s30, %s4085_s30   ;;  %s3091_s29 = sphi %s3236_s29, %s4087_s29   ;;  %s3087_s28 = sphi %s3234_s28, %s4089_s28   ;;  %s3083_s3 = sphi %s3232_s3, %s4088_s3  }
  0x24   : > { %4021 = sst [smem:[#allocation36_spill]] %s3091_s29  ;;  %s601_s0 = sshll.u32 %s3097_s4, 4  ;;  %s602_s0 = int_to_ptr.vmem [resolvable:$true] %s601_s0 }
  0x25   : > { %s3253_s23 = sadd.s32 4294967295, %s3095_s30   ;;  %p2151_p0 = scmp.ge.s32.totalorder %s3095_s30, 1 }
  0x26   : > { %4022 = sst [smem:[#allocation37_spill]] %s3253_s23  ;;  %p3970_p1 = scmp.eq.s32.totalorder %s3253_s23, 0 }
  0x27   : > { %p585_p2 = scmp.lt.s32.totalorder %s3095_s30, 3  ;;  %s3098_s5 = smov [#allocation8]  }
  0x28   : > { %s625_s24 = sshll.u32 %s3098_s5, 4  ;;  %s3099_s25 = smov [#allocation14]   ;;  %s3265_s24 = int_to_ptr.vmem [resolvable:$true] %s625_s24 }
  0x29   : > { %p3258_p3 = pnand %p2151_p0, %p585_p2  ;;  %s653_s26 = sshll.u32 %s3099_s25, 4  ;;  %s3273_s26 = int_to_ptr.vmem [resolvable:$true] %s653_s26 }
  0x2a   : > { %s4025_s4 = sld [smem:[#allocation44_spill]] }
  0x2b   : > { %s4023_s1 = scalar_select %p3258_p3, 1, 0 }
  0x2c   : > { %p2430_p5 = pneg %p3258_p3 }
  0x2e   : > { %p3269_p6 = pnand %p2430_p5, %p3970_p1 }
  0x30   : > { %s4024_s6 = scalar_select %p3269_p6, 1, 0 }
  0x31   : > { %s2599_s22 = scalar_lea.hbm %s4025_s4, 32  ;;  %p3283_p8 = pneg %p3269_p6 }
  0x32   : > { %p2600_p7 = scmp.ne.s32.totalorder %s4025_s4, %s2599_s22  ;;  %p2606_p11 = scmp.lt.u32.totalorder %s2599_s22, %s4025_s4 }
  0x33   : > { %s4026_s5 = scalar_select %p3283_p8, 1, 0 }
  0x34   : > { %p2602_p9 = pnand %p3283_p8, %p2600_p7 }
  0x36   : > { %p2603_p10 = pneg %p2602_p9 }
  0x38   : > { %p2608_p12 = pnand %p2606_p11, %p2603_p10 }
  0x3a   : > { %2611 = shalt.err (!%p2608_p12)
}
  0x3b   : > { %s2612_s2 = scalar_lea.vmem %s602_s0, 32  ;;  %p2620_p5 = scmp.lt.s32.totalorder %s602_s0, %s602_s0 }
  0x3c   : > { %p2613_p13 = scmp.ne.s32.totalorder %s602_s0, %s2612_s2  ;;  %p2621_p4 = scmp.lt.s32.totalorder %s2612_s2, %s2612_s2 }
  0x3e   : > { %p2615_p0 = pnand %p2613_p13, %p3283_p8  ;;  %p2622_p1 = por %p2621_p4, %p2620_p5 }
  0x40   : > { %p2616_p2 = pneg %p2615_p0 }
  0x42   : > { %p2623_p3 = pnand %p2622_p1, %p2616_p2 }
  0x44   : > { %2626 = shalt.err (!%p2623_p3)
}
  0x45   : > { %2433 = dma.hbm_to_vmem [thread:$0]  (!%p3269_p6), %s4025_s4, 32, %s602_s0, [#allocation6]  }
  0x46   : > { %s4027_s27 = sld [smem:[#allocation47_spill]] }
  0x4c   : > { %s2627_s25 = scalar_lea.hbm %s4027_s27, 2048 }
  0x4d   : > { %p2628_p7 = scmp.ne.s32.totalorder %s4027_s27, %s2627_s25  ;;  %p2634_p1 = scmp.lt.u32.totalorder %s2627_s25, %s4027_s27 }
  0x4f   : > { %p2630_p9 = pnand %p2628_p7, %p3283_p8 }
  0x51   : > { %p2631_p4 = pneg %p2630_p9 }
  0x53   : > { %p2636_p3 = pnand %p2634_p1, %p2631_p4 }
  0x55   : > { %2639 = shalt.err (!%p2636_p3)
}
  0x56   : > { %s2640_s0 = scalar_lea.vmem %s3265_s24, 2048  ;;  %p2648_p13 = scmp.lt.s32.totalorder %s3265_s24, %s3265_s24 }
  0x57   : > { %p2641_p10 = scmp.ne.s32.totalorder %s3265_s24, %s2640_s0  ;;  %p2649_p0 = scmp.lt.s32.totalorder %s2640_s0, %s2640_s0 }
  0x59   : > { %p2643_p11 = pnand %p2641_p10, %p3283_p8  ;;  %p2650_p2 = por %p2649_p0, %p2648_p13 }
  0x5b   : > { %p2644_p12 = pneg %p2643_p11 }
  0x5d   : > { %p2651_p5 = pnand %p2650_p2, %p2644_p12 }
  0x5f   : > { %2654 = shalt.err (!%p2651_p5)
}
  0x60   : > { %s3100_s15 = smov 64   ;;  %s3101_s11 = smov 4  }
  0x61   : > { %2439 = dma.hbm_to_vmem [thread:$0]  (!%p3269_p6), %s4027_s27, 2048, %s3265_s24, [#allocation9], %s3100_s15, %s3100_s15, %s3101_s11  }
  0x62   : > { %s4028_s10 = sld [smem:[#allocation51_spill]] }
  0x68   : > { %s2655_s22 = scalar_lea.hbm %s4028_s10, 16 }
  0x69   : > { %p2656_p7 = scmp.ne.s32.totalorder %s4028_s10, %s2655_s22  ;;  %p2662_p1 = scmp.lt.u32.totalorder %s2655_s22, %s4028_s10 }
  0x6b   : > { %p2658_p9 = pnand %p2656_p7, %p3283_p8 }
  0x6d   : > { %p2659_p4 = pneg %p2658_p9 }
  0x6f   : > { %p2664_p3 = pnand %p2662_p1, %p2659_p4 }
  0x71   : > { %2667 = shalt.err (!%p2664_p3)
}
  0x72   : > { %s2668_s24 = scalar_lea.vmem %s3273_s26, 16  ;;  %s2675_s15 = scalar_lea.vmem %s3273_s26, 32 }
  0x73   : > { %p2669_p10 = scmp.ne.s32.totalorder %s3273_s26, %s2668_s24  ;;  %p2676_p13 = scmp.lt.s32.totalorder %s3273_s26, %s3273_s26 }
  0x74   : > { %p2677_p0 = scmp.lt.s32.totalorder %s2675_s15, %s2668_s24 }
  0x75   : > { %p2671_p11 = pnand %p2669_p10, %p3283_p8 }
  0x76   : > { %p2678_p2 = por %p2677_p0, %p2676_p13 }
  0x77   : > { %p2672_p12 = pneg %p2671_p11 }
  0x79   : > { %p2679_p5 = pnand %p2678_p2, %p2672_p12 }
  0x7b   : > { %2682 = shalt.err (!%p2679_p5)
}
  0x7c   : > { %2445 = dma.hbm_to_vmem [thread:$0]  (!%p3269_p6), %s4028_s10, 16, %s3273_s26, [#allocation15]  }
  0x7d   : > { %s3102_s17 = smov [#allocation20]   ;;  %s4029_s16 = sld [smem:[#allocation55_spill]] }
  0x7e   : > { %s681_s20 = sshll.u32 %s3102_s17, 4  ;;  %s682_s20 = int_to_ptr.vmem [resolvable:$true] %s681_s20 }
  0x83   : > { %s2683_s22 = scalar_lea.hbm %s4029_s16, 16 }
  0x84   : > { %p2684_p7 = scmp.ne.s32.totalorder %s4029_s16, %s2683_s22  ;;  %p2690_p1 = scmp.lt.u32.totalorder %s2683_s22, %s4029_s16 }
  0x86   : > { %p2686_p9 = pnand %p2684_p7, %p3283_p8 }
  0x88   : > { %p2687_p4 = pneg %p2686_p9 }
  0x8a   : > { %p2692_p3 = pnand %p2690_p1, %p2687_p4 }
  0x8c   : > { %2695 = shalt.err (!%p2692_p3)
}
  0x8d   : > { %s2696_s26 = scalar_lea.vmem %s682_s20, 16  ;;  %s2703_s15 = scalar_lea.vmem %s682_s20, 32 }
  0x8e   : > { %p2697_p10 = scmp.ne.s32.totalorder %s682_s20, %s2696_s26  ;;  %p2704_p13 = scmp.lt.s32.totalorder %s682_s20, %s682_s20 }
  0x8f   : > { %p2705_p0 = scmp.lt.s32.totalorder %s2703_s15, %s2696_s26 }
  0x90   : > { %p2699_p11 = pnand %p2697_p10, %p3283_p8 }
  0x91   : > { %p2706_p2 = por %p2705_p0, %p2704_p13 }
  0x92   : > { %p2700_p12 = pneg %p2699_p11 }
  0x94   : > { %p2707_p5 = pnand %p2706_p2, %p2700_p12 }
  0x96   : > { %2710 = shalt.err (!%p2707_p5)
}
  0x97   : > { %2451 = dma.hbm_to_vmem [thread:$0]  (!%p3269_p6), %s4029_s16, 16, %s682_s20, [#allocation21]  }
  0x98   : > { %s2150_s17 = sadd.s32 4294967294, %s3095_s30   ;;  %s3366_s21 = sadd.s32 1, %s3095_s30  }
  0x99   : > { %4030 = sst [smem:[#allocation38_spill]] %s3366_s21  ;;  %s56_s19 = ssub.s32 %s3095_s30, %s3366_s21 }
  0x9a   : > { %s59_s22 = sadd.s32 1, %s3091_s29  ;;  %p57_p7 = scmp.eq.s32.totalorder %s56_s19, 0 }
  0x9b   : > { %p66_p9 = scmp.ne.s32.totalorder %s3091_s29, %s3087_s28  ;;  %p67_p4 = scmp.eq.s32.totalorder %s3095_s30, 0 }
  0x9c   : > { %p72_p1 = scmp.ne.s32.totalorder %s3087_s28, %s3083_s3  ;;  %p4032_p10 = scmp.eq.s32.totalorder %s3253_s23, 0 }
  0x9d   : > { %s3377_s25 = scalar_select %p57_p7, %s3091_s29, %s59_s22  }
  0x9e   : > { %p68_p3 = por %p67_p4, %p66_p9  ;;  %p3381_p11 = por %p4032_p10, %p72_p1 }
  0x9f   : > { %4031 = sst [smem:[#allocation39_spill]] %s3377_s25  ;;  %p546_p12 = scmp.eq.s32.totalorder %s3253_s23, 1 }
  0xa0   : > { %s4033_s2 = scalar_select %p3381_p11, 1, 0 }
  0xa1   : > { %p552_p13 = scmp.eq.s32.totalorder %s2150_s17, 1  ;;  %p2486_p0 = scmp.lt.s32.totalorder %s3095_s30, 2 }
  0xa2   : > { %s3388_s20 = sand.u32 1, %s3091_s29   ;;  %p3390_p2 = por %p546_p12, %p66_p9 }
  0xa3   : > { %p3394_p5 = por %p552_p13, %p72_p1  ;;  %s3980_s26 = sshll.u32 %s3388_s20, 2 }
  0xa4   : > { %s4034_s0 = scalar_select %p3390_p2, 1, 0 }
  0xa5   : > { %s4036_s24 = scalar_select %p3394_p5, 1, 0 }
  0xa6   : > { %4035 = sst [smem:[#allocation40_spill]] %s4034_s0  ;;  %s3981_s15 = sshll.u32 %s3095_s30, 6 }
  0xa7   : > { %4037 = sst [smem:[#allocation41_spill]] %s4036_s24  ;;  %p3400_p7 = pnand %p2486_p0, %p68_p3 }
  0xa8   : > { %s3984_s11 = sand.u32 1, %s3095_s30   ;;  %s4039_s7 = sld [smem:[#allocation49_spill]] }
  0xa9   : > { %s4038_s4 = scalar_select %p3400_p7, 1, 0 }
  0xaa   : > { %s728_s10 = scalar_lea.vmem [#allocation11], %s3980_s26  ;;  %s3415_s27 = sshll.u32 %s3388_s20, 1 }
  0xab   : > { %s736_s16 = sshll.u32 %s728_s10, 4  ;;  %s3420_s25 = sshll.u32 %s3095_s30, 5  ;;  %s3417_s16 = int_to_ptr.vmem [resolvable:$true] %s736_s16 }
  0xac   : > { %s3424_s29 = scalar_lea.sflag [#allocation12], %s3984_s11  ;;  %p3430_p4 = pneg %p3400_p7 }
  0xae   : > { %s3410_s22 = scalar_lea.hbm %s4039_s7, %s3981_s15  ;;  %s2716_s26 = scalar_lea.hbm %s4039_s7, 128 }
  0xaf   : > { %s2711_s21 = scalar_lea.hbm %s3410_s22, 64  ;;  %p2717_p10 = scmp.lt.u32.totalorder %s3410_s22, %s4039_s7 }
  0xb0   : > { %p2712_p9 = scmp.ne.s32.totalorder %s3410_s22, %s2711_s21  ;;  %p2718_p12 = scmp.lt.u32.totalorder %s2716_s26, %s2711_s21 }
  0xb1   : > { %s4040_s17 = scalar_select %p3430_p4, 1, 0 }
  0xb2   : > { %p2714_p1 = pnand %p3430_p4, %p2712_p9  ;;  %p2719_p13 = por %p2718_p12, %p2717_p10 }
  0xb3   : > { %p2720_p0 = scmp.lt.u32.totalorder %s2711_s21, %s3410_s22 }
  0xb4   : > { %p2715_p3 = pneg %p2714_p1 }
  0xb5   : > { %p2721_p5 = por %p2720_p0, %p2719_p13 }
  0xb7   : > { %p2722_p2 = pnand %p2721_p5, %p2715_p3 }
  0xb9   : > { %2725 = shalt.err (!%p2722_p2)
}
  0xba   : > { %s2726_s11 = scalar_lea.vmem %s3417_s16, 64  ;;  %s3103_s10 = smov [#allocation11]  }
  0xbb   : > { %p2727_p9 = scmp.ne.s32.totalorder %s3417_s16, %s2726_s11  ;;  %s2731_s19 = sshll.u32 %s3103_s10, 4  ;;  %s2732_s19 = int_to_ptr.vmem [resolvable:$false] %s2731_s19 }
  0xbc   : > { %s2733_s24 = scalar_lea.vmem %s2732_s19, 128  ;;  %p2734_p6 = scmp.lt.s32.totalorder %s3417_s16, %s2732_s19 }
  0xbd   : > { %p2729_p1 = pnand %p2727_p9, %p3430_p4  ;;  %p2735_p8 = scmp.lt.s32.totalorder %s2733_s24, %s2726_s11 }
  0xbf   : > { %p2730_p11 = pneg %p2729_p1  ;;  %p2736_p10 = por %p2735_p8, %p2734_p6 }
  0xc1   : > { %p2737_p12 = pnand %p2736_p10, %p2730_p11 }
  0xc3   : > { %2740 = shalt.err (!%p2737_p12)
}
  0xc4   : > { %2461 = dma.hbm_to_vmem [thread:$0]  (!%p3400_p7), %s3410_s22, 64, %s3417_s16, %s3424_s29  }
  0xc5   : > { %s4041_s13 = sld [smem:[#allocation53_spill]]  ;;  %s765_s11 = scalar_lea.vmem [#allocation17], %s3415_s27 }
  0xc6   : > { %s772_s10 = sshll.u32 %s765_s11, 4  ;;  %s4042_s19 = sand.u32 1, %s3095_s30   ;;  %s773_s10 = int_to_ptr.vmem [resolvable:$true] %s772_s10 }
  0xc7   : > { %s3463_s24 = scalar_lea.sflag [#allocation18], %s4042_s19 }
  0xcb   : > { %s3458_s15 = scalar_lea.hbm %s4041_s13, %s3420_s25  ;;  %s2746_s21 = scalar_lea.hbm %s4041_s13, 64 }
  0xcc   : > { %s2741_s7 = scalar_lea.hbm %s3458_s15, 32  ;;  %p2747_p2 = scmp.lt.u32.totalorder %s3458_s15, %s4041_s13 }
  0xcd   : > { %p2742_p6 = scmp.ne.s32.totalorder %s3458_s15, %s2741_s7  ;;  %p2748_p5 = scmp.lt.u32.totalorder %s2746_s21, %s2741_s7 }
  0xce   : > { %p2750_p13 = scmp.lt.u32.totalorder %s2741_s7, %s3458_s15 }
  0xcf   : > { %p2744_p8 = pnand %p2742_p6, %p3430_p4  ;;  %p2749_p3 = por %p2748_p5, %p2747_p2 }
  0xd1   : > { %p2745_p11 = pneg %p2744_p8  ;;  %p2751_p0 = por %p2750_p13, %p2749_p3 }
  0xd3   : > { %p2752_p9 = pnand %p2751_p0, %p2745_p11 }
  0xd5   : > { %2755 = shalt.err (!%p2752_p9)
}
  0xd6   : > { %s2756_s11 = scalar_lea.vmem %s773_s10, 32  ;;  %s3104_s19 = smov [#allocation17]  }
  0xd7   : > { %p2757_p1 = scmp.ne.s32.totalorder %s773_s10, %s2756_s11  ;;  %s2761_s0 = sshll.u32 %s3104_s19, 4  ;;  %s2762_s0 = int_to_ptr.vmem [resolvable:$false] %s2761_s0 }
  0xd8   : > { %s2763_s16 = scalar_lea.vmem %s2762_s0, 64  ;;  %p2764_p6 = scmp.lt.s32.totalorder %s773_s10, %s2762_s0 }
  0xd9   : > { %p2759_p10 = pnand %p2757_p1, %p3430_p4  ;;  %p2765_p8 = scmp.lt.s32.totalorder %s2763_s16, %s2756_s11 }
  0xdb   : > { %p2760_p12 = pneg %p2759_p10  ;;  %p2766_p7 = por %p2765_p8, %p2764_p6 }
  0xdd   : > { %p2767_p2 = pnand %p2766_p7, %p2760_p12 }
  0xdf   : > { %2770 = shalt.err (!%p2767_p2)
}
  0xe0   : > { %p4043_p5 = scmp.ne.s32.totalorder %s4038_s4, 0  ;;  %s3105_s7 = smov [#allocation7]  }
  0xe1   : > { %s615_s3 = sshll.u32 %s3105_s7, 4  ;;  %s3106_s22 = smov [#allocation10]   ;;  %s616_s3 = int_to_ptr.vmem [resolvable:$true] %s615_s3 }
  0xe2   : > { %2467 = dma.hbm_to_vmem [thread:$0]  (!%p4043_p5), %s3458_s15, 32, %s773_s10, %s3463_s24  }
  0xe3   : > { %s639_s21 = sshll.u32 %s3106_s22, 4  ;;  %s4044_s13 = sld [smem:[#allocation46_spill]]  ;;  %s640_s21 = int_to_ptr.vmem [resolvable:$true] %s639_s21 }
  0xe4   : > { %p4045_p11 = scmp.ne.s32.totalorder %s4026_s5, 0 }
  0xe9   : > { %s2771_s9 = scalar_lea.hbm %s4044_s13, 16 }
  0xea   : > { %p2772_p7 = scmp.ne.s32.totalorder %s4044_s13, %s2771_s9  ;;  %p2778_p0 = scmp.lt.u32.totalorder %s2771_s9, %s4044_s13 }
  0xec   : > { %p2774_p3 = pnand %p2772_p7, %p4045_p11 }
  0xee   : > { %p2775_p13 = pneg %p2774_p3 }
  0xf0   : > { %p2780_p9 = pnand %p2778_p0, %p2775_p13 }
  0xf2   : > { %2783 = shalt.err (!%p2780_p9)
}
  0xf3   : > { %s2784_s15 = scalar_lea.vmem %s616_s3, 16  ;;  %s2791_s10 = scalar_lea.vmem %s616_s3, 32 }
  0xf4   : > { %p2785_p1 = scmp.ne.s32.totalorder %s616_s3, %s2784_s15  ;;  %p2792_p6 = scmp.lt.s32.totalorder %s616_s3, %s616_s3 }
  0xf5   : > { %p2793_p8 = scmp.lt.s32.totalorder %s2791_s10, %s2784_s15 }
  0xf6   : > { %p2787_p10 = pnand %p2785_p1, %p4045_p11 }
  0xf7   : > { %p2794_p2 = por %p2793_p8, %p2792_p6 }
  0xf8   : > { %p2788_p12 = pneg %p2787_p10 }
  0xfa   : > { %p2795_p5 = pnand %p2794_p2, %p2788_p12 }
  0xfc   : > { %2798 = shalt.err (!%p2795_p5)
}
  0xfd   : > { %p4046_p7 = scmp.ne.s32.totalorder %s4024_s6, 0  ;;  %s4047_s26 = sld [smem:[#allocation48_spill]] }
  0xff   : > { %2436 = dma.hbm_to_vmem [thread:$0]  (!%p4046_p7), %s4044_s13, 16, %s616_s3, [#allocation6]  }
 0x103   : > { %s2799_s19 = scalar_lea.hbm %s4047_s26, 16 }
 0x104   : > { %p2800_p3 = scmp.ne.s32.totalorder %s4047_s26, %s2799_s19  ;;  %p2806_p5 = scmp.lt.u32.totalorder %s2799_s19, %s4047_s26 }
 0x106   : > { %p2802_p13 = pnand %p2800_p3, %p4045_p11 }
 0x108   : > { %p2803_p0 = pneg %p2802_p13 }
 0x10a   : > { %p2808_p9 = pnand %p2806_p5, %p2803_p0 }
 0x10c   : > { %2811 = shalt.err (!%p2808_p9)
}
 0x10d   : > { %s2812_s10 = scalar_lea.vmem %s640_s21, 16  ;;  %s2819_s3 = scalar_lea.vmem %s640_s21, 32 }
 0x10e   : > { %p2813_p1 = scmp.ne.s32.totalorder %s640_s21, %s2812_s10  ;;  %p2820_p6 = scmp.lt.s32.totalorder %s640_s21, %s640_s21 }
 0x10f   : > { %p2821_p8 = scmp.lt.s32.totalorder %s2819_s3, %s2812_s10 }
 0x110   : > { %p2815_p10 = pnand %p2813_p1, %p4045_p11 }
 0x111   : > { %p2822_p2 = por %p2821_p8, %p2820_p6 }
 0x112   : > { %p2816_p12 = pneg %p2815_p10 }
 0x114   : > { %p2823_p4 = pnand %p2822_p2, %p2816_p12 }
 0x116   : > { %2826 = shalt.err (!%p2823_p4)
}
 0x117   : > { %2442 = dma.hbm_to_vmem [thread:$0]  (!%p4046_p7), %s4047_s26, 16, %s640_s21, [#allocation9]  }
 0x118   : > { %s3107_s9 = smov [#allocation16]   ;;  %s3108_s19 = smov [#allocation22]  }
 0x119   : > { %s667_s23 = sshll.u32 %s3107_s9, 4  ;;  %s695_s0 = sshll.u32 %s3108_s19, 4  ;;  %s668_s23 = int_to_ptr.vmem [resolvable:$true] %s667_s23  ;;  %s696_s0 = int_to_ptr.vmem [resolvable:$true] %s695_s0 }
 0x11a   : > { %s2827_s15 = scalar_lea.hbm %s3950_s12, 16 }
 0x11b   : > { %p2828_p4 = scmp.ne.s32.totalorder %s3950_s12, %s2827_s15  ;;  %p2834_p0 = scmp.lt.u32.totalorder %s2827_s15, %s3950_s12 }
 0x11d   : > { %p2830_p3 = pnand %p2828_p4, %p4045_p11 }
 0x11f   : > { %p2831_p13 = pneg %p2830_p3 }
 0x121   : > { %p2836_p5 = pnand %p2834_p0, %p2831_p13 }
 0x123   : > { %2839 = shalt.err (!%p2836_p5)
}
 0x124   : > { %s2840_s21 = scalar_lea.vmem %s668_s23, 16  ;;  %s2847_s22 = scalar_lea.vmem %s668_s23, 32 }
 0x125   : > { %p2841_p9 = scmp.ne.s32.totalorder %s668_s23, %s2840_s21  ;;  %p2848_p12 = scmp.lt.s32.totalorder %s668_s23, %s668_s23 }
 0x126   : > { %p2849_p6 = scmp.lt.s32.totalorder %s2847_s22, %s2840_s21 }
 0x127   : > { %p2843_p1 = pnand %p2841_p9, %p4045_p11 }
 0x128   : > { %p2850_p8 = por %p2849_p6, %p2848_p12 }
 0x129   : > { %p2844_p10 = pneg %p2843_p1 }
 0x12b   : > { %p2851_p2 = pnand %p2850_p8, %p2844_p10 }
 0x12d   : > { %2854 = shalt.err (!%p2851_p2)
}
 0x12e   : > { %2448 = dma.hbm_to_vmem [thread:$0]  (!%p4046_p7), %s3950_s12, 16, %s668_s23, [#allocation15]  }
 0x12f   : > { %s2855_s16 = scalar_lea.hbm %s3956_s18, 16 }
 0x130   : > { %p2856_p4 = scmp.ne.s32.totalorder %s3956_s18, %s2855_s16  ;;  %p2862_p0 = scmp.lt.u32.totalorder %s2855_s16, %s3956_s18 }
 0x132   : > { %p2858_p3 = pnand %p2856_p4, %p4045_p11 }
 0x134   : > { %p2859_p13 = pneg %p2858_p3 }
 0x136   : > { %p2864_p5 = pnand %p2862_p0, %p2859_p13 }
 0x138   : > { %2867 = shalt.err (!%p2864_p5)
}
 0x139   : > { %s2868_s21 = scalar_lea.vmem %s696_s0, 16  ;;  %s2875_s23 = scalar_lea.vmem %s696_s0, 32 }
 0x13a   : > { %p2869_p9 = scmp.ne.s32.totalorder %s696_s0, %s2868_s21  ;;  %p2876_p12 = scmp.lt.s32.totalorder %s696_s0, %s696_s0 }
 0x13b   : > { %p2877_p6 = scmp.lt.s32.totalorder %s2875_s23, %s2868_s21 }
 0x13c   : > { %p2871_p1 = pnand %p2869_p9, %p4045_p11 }
 0x13d   : > { %p2878_p8 = por %p2877_p6, %p2876_p12 }
 0x13e   : > { %p2872_p10 = pneg %p2871_p1 }
 0x140   : > { %p2879_p2 = pnand %p2878_p8, %p2872_p10 }
 0x142   : > { %2882 = shalt.err (!%p2879_p2)
}
 0x143   : > { %2454 = dma.hbm_to_vmem [thread:$0]  (!%p4046_p7), %s3956_s18, 16, %s696_s0, [#allocation21]  }
 0x144   : > { %s4048_s5 = sshll.u32 %s3095_s30, 6  ;;  %s4049_s11 = sld [smem:[#allocation42_spill]] }
 0x145   : > { %s4050_s15 = sshll.u32 %s3388_s20, 2  ;;  %s3570_s21 = scalar_lea.hbm %s3946_s8, %s3420_s25 }
 0x146   : > { %s710_s6 = scalar_lea.vmem [#allocation2], %s4050_s15  ;;  %s707_s0 = scalar_lea.sflag [#allocation3], %s3388_s20 }
 0x147   : > { %s717_s10 = sshll.u32 %s710_s6, 4  ;;  %p4051_p7 = scmp.ne.s32.totalorder %s4040_s17, 0  ;;  %s3564_s10 = int_to_ptr.vmem [resolvable:$true] %s717_s10 }
 0x14a   : > { %s3560_s16 = scalar_lea.hbm %s4049_s11, %s4048_s5  ;;  %s2888_s5 = scalar_lea.hbm %s4049_s11, 128 }
 0x14b   : > { %s2883_s23 = scalar_lea.hbm %s3560_s16, 64  ;;  %p2889_p13 = scmp.lt.u32.totalorder %s3560_s16, %s4049_s11 }
 0x14c   : > { %p2884_p11 = scmp.ne.s32.totalorder %s3560_s16, %s2883_s23  ;;  %p2890_p0 = scmp.lt.u32.totalorder %s2888_s5, %s2883_s23 }
 0x14d   : > { %p2892_p9 = scmp.lt.u32.totalorder %s2883_s23, %s3560_s16 }
 0x14e   : > { %p2886_p4 = pnand %p2884_p11, %p4051_p7  ;;  %p2891_p5 = por %p2890_p0, %p2889_p13 }
 0x150   : > { %p2887_p3 = pneg %p2886_p4  ;;  %p2893_p1 = por %p2892_p9, %p2891_p5 }
 0x152   : > { %p2894_p10 = pnand %p2893_p1, %p2887_p3 }
 0x154   : > { %2897 = shalt.err (!%p2894_p10)
}
 0x155   : > { %s2898_s20 = scalar_lea.vmem %s3564_s10, 64  ;;  %s3109_s15 = smov [#allocation2]  }
 0x156   : > { %p2899_p12 = scmp.ne.s32.totalorder %s3564_s10, %s2898_s20  ;;  %s2903_s6 = sshll.u32 %s3109_s15, 4  ;;  %s2904_s6 = int_to_ptr.vmem [resolvable:$false] %s2903_s6 }
 0x157   : > { %s2905_s3 = scalar_lea.vmem %s2904_s6, 128  ;;  %p2906_p2 = scmp.lt.s32.totalorder %s3564_s10, %s2904_s6 }
 0x158   : > { %p2901_p6 = pnand %p2899_p12, %p4051_p7  ;;  %p2907_p11 = scmp.lt.s32.totalorder %s2905_s3, %s2898_s20 }
 0x15a   : > { %p2902_p8 = pneg %p2901_p6  ;;  %p2908_p4 = por %p2907_p11, %p2906_p2 }
 0x15c   : > { %p2909_p13 = pnand %p2908_p4, %p2902_p8 }
 0x15e   : > { %2912 = shalt.err (!%p2909_p13)
}
 0x15f   : > { %p4052_p3 = scmp.ne.s32.totalorder %s4038_s4, 0  ;;  %s747_s7 = scalar_lea.vmem [#allocation13], %s3415_s27 }
 0x160   : > { %s754_s23 = sshll.u32 %s747_s7, 4  ;;  %s3599_s5 = scalar_lea.hbm %s3952_s14, %s3420_s25  ;;  %s755_s23 = int_to_ptr.vmem [resolvable:$true] %s754_s23 }
 0x161   : > { %2458 = dma.hbm_to_vmem [thread:$0]  (!%p4052_p3), %s3560_s16, 64, %s3564_s10, %s707_s0  }
 0x162   : > { %s2913_s19 = scalar_lea.hbm %s3570_s21, 32  ;;  %s2918_s15 = scalar_lea.hbm %s3946_s8, 64 }
 0x163   : > { %p2914_p0 = scmp.ne.s32.totalorder %s3570_s21, %s2913_s19  ;;  %p2919_p1 = scmp.lt.u32.totalorder %s3570_s21, %s3946_s8 }
 0x164   : > { %p2920_p10 = scmp.lt.u32.totalorder %s2918_s15, %s2913_s19  ;;  %p2922_p6 = scmp.lt.u32.totalorder %s2913_s19, %s3570_s21 }
 0x165   : > { %p2916_p5 = pnand %p2914_p0, %p4051_p7 }
 0x166   : > { %p2921_p12 = por %p2920_p10, %p2919_p1 }
 0x167   : > { %p2917_p9 = pneg %p2916_p5 }
 0x168   : > { %p2923_p8 = por %p2922_p6, %p2921_p12 }
 0x16a   : > { %p2924_p2 = pnand %p2923_p8, %p2917_p9 }
 0x16c   : > { %2927 = shalt.err (!%p2924_p2)
}
 0x16d   : > { %s2928_s25 = scalar_lea.vmem %s755_s23, 32  ;;  %s3110_s16 = smov [#allocation13]  }
 0x16e   : > { %p2929_p11 = scmp.ne.s32.totalorder %s755_s23, %s2928_s25  ;;  %s2933_s10 = sshll.u32 %s3110_s16, 4  ;;  %s2934_s10 = int_to_ptr.vmem [resolvable:$false] %s2933_s10 }
 0x16f   : > { %s2935_s0 = scalar_lea.vmem %s2934_s10, 64  ;;  %p2936_p0 = scmp.lt.s32.totalorder %s755_s23, %s2934_s10 }
 0x170   : > { %p2931_p4 = pnand %p2929_p11, %p4051_p7  ;;  %p2937_p5 = scmp.lt.s32.totalorder %s2935_s0, %s2928_s25 }
 0x172   : > { %p2932_p13 = pneg %p2931_p4  ;;  %p2938_p3 = por %p2937_p5, %p2936_p0 }
 0x174   : > { %p2939_p1 = pnand %p2938_p3, %p2932_p13 }
 0x176   : > { %2942 = shalt.err (!%p2939_p1)
}
 0x177   : > { %p4053_p10 = scmp.ne.s32.totalorder %s4038_s4, 0  ;;  %s783_s7 = scalar_lea.vmem [#allocation19], %s3415_s27 }
 0x178   : > { %s790_s22 = sshll.u32 %s783_s7, 4  ;;  %s2943_s9 = scalar_lea.hbm %s3599_s5, 32  ;;  %s791_s22 = int_to_ptr.vmem [resolvable:$true] %s790_s22 }
 0x179   : > { %2464 = dma.hbm_to_vmem [thread:$0]  (!%p4053_p10), %s3570_s21, 32, %s755_s23, %s3424_s29  }
 0x17a   : > { %p2944_p9 = scmp.ne.s32.totalorder %s3599_s5, %s2943_s9  ;;  %s2948_s20 = scalar_lea.hbm %s3952_s14, 64 }
 0x17b   : > { %p2949_p6 = scmp.lt.u32.totalorder %s3599_s5, %s3952_s14  ;;  %p2950_p8 = scmp.lt.u32.totalorder %s2948_s20, %s2943_s9 }
 0x17c   : > { %p2946_p12 = pnand %p2944_p9, %p4051_p7  ;;  %p2952_p11 = scmp.lt.u32.totalorder %s2943_s9, %s3599_s5 }
 0x17d   : > { %p2951_p2 = por %p2950_p8, %p2949_p6 }
 0x17e   : > { %p2947_p3 = pneg %p2946_p12 }
 0x17f   : > { %p2953_p4 = por %p2952_p11, %p2951_p2 }
 0x181   : > { %p2954_p13 = pnand %p2953_p4, %p2947_p3 }
 0x183   : > { %2957 = shalt.err (!%p2954_p13)
}
 0x184   : > { %s2958_s29 = scalar_lea.vmem %s791_s22, 32  ;;  %s3111_s27 = smov [#allocation19]  }
 0x185   : > { %p2959_p0 = scmp.ne.s32.totalorder %s791_s22, %s2958_s29  ;;  %s2963_s21 = sshll.u32 %s3111_s27, 4  ;;  %s2964_s21 = int_to_ptr.vmem [resolvable:$false] %s2963_s21 }
 0x186   : > { %s2965_s23 = scalar_lea.vmem %s2964_s21, 64  ;;  %p2966_p9 = scmp.lt.s32.totalorder %s791_s22, %s2964_s21 }
 0x187   : > { %p2961_p5 = pnand %p2959_p0, %p4051_p7  ;;  %p2967_p12 = scmp.lt.s32.totalorder %s2965_s23, %s2958_s29 }
 0x189   : > { %p2962_p1 = pneg %p2961_p5  ;;  %p2968_p10 = por %p2967_p12, %p2966_p9 }
 0x18b   : > { %p2969_p6 = pnand %p2968_p10, %p2962_p1 }
 0x18d   : > { %2972 = shalt.err (!%p2969_p6)
}
 0x18e   : > { %p4054_p8 = scmp.ne.s32.totalorder %s4038_s4, 0  ;;  %p4055_p3 = scmp.ne.s32.totalorder %s4023_s1, 0 }
 0x18f   : > { %s3641_s17 = sand.u32 (!%p4055_p3), 1, %s3087_s28   ;;  %p4056_p7 = scmp.ne.s32.totalorder (!%p4055_p3), %s4033_s2, 0 }
 0x190   : > { %2470 = dma.hbm_to_vmem [thread:$0]  (!%p4054_p8), %s3599_s5, 32, %s791_s22, %s3463_s24  }
 0x191   : > { %813 = sbr.rel (%p4055_p3) target bundleno = 1382 (0x566), region = 104  ;;  %s2173_s3 = sshll.u32 (!%p4055_p3), %s3641_s17, 2 }
 0x192   : > { %s816_s25 = scalar_lea.sflag (!%p4055_p3), [#allocation3], %s3641_s17  ;;  %s3645_s16 = scalar_lea.vmem (!%p4055_p3), [#allocation2], %s2173_s3 }
 0x198   : > { %3046 = dma.done.wait (%p4056_p7), %s816_s25, 64  }
 0x199   : > { %3048 = vsyncadd (%p4056_p7), %s816_s25, 4294967232  ;;  %s4057_s4 = sld [smem:[#allocation37_spill]] }
 0x19f   : > { %p4058_p10 = scmp.eq.s32.totalorder %s4057_s4, 0 }
 0x1a1   : > { %3050 = dma.done.wait (%p4058_p10), [#allocation6], 48   ;;  %p4059_p2 = pmov %p4058_p10 }
 0x1a3   : > { %3052 = vsyncadd (%p4059_p2), [#allocation6], 4294967248  ;;  %p4060_p11 = pmov %p4059_p2 }
 0x1a4   : > { %p4061_p4 = pmov %p4059_p2 }
 0x1a5   : > { %3054 = dma.done.wait (%p4060_p11), [#allocation9], 2064  }
 0x1a6   : > { %3056 = vsyncadd (%p4061_p4), [#allocation9], 4294965232  ;;  %s840_s1 = sand.u32 1, %s4057_s4   ;;  %s3660_s5 = scalar_lea.vmem [#allocation11], %s2173_s3 }
 0x1a7   : > { %s841_s24 = scalar_lea.sflag [#allocation12], %s840_s1 }
 0x1a8   : > { %3058 = dma.done.wait (%p4056_p7), %s841_s24, 96  }
 0x1a9   : > { %3060 = vsyncadd (%p4056_p7), %s841_s24, 4294967200  ;;  %s3667_s10 = sshll.u32 %s3641_s17, 1  ;;  %p4062_p13 = pmov %p4059_p2 }
 0x1aa   : > { %s853_s0 = scalar_lea.vmem [#allocation13], %s3667_s10 }
 0x1ab   : > { %3062 = dma.done.wait (%p4062_p13), [#allocation15], 32   ;;  %p4063_p0 = pmov %p4059_p2 }
 0x1ac   : > { %s867_s7 = scalar_lea.sflag [#allocation18], %s840_s1  ;;  %s870_s22 = scalar_lea.vmem [#allocation17], %s3667_s10 }
 0x1ad   : > { %3064 = vsyncadd (%p4063_p0), [#allocation15], 4294967264 }
 0x1ae   : > { %3066 = dma.done.wait (%p4056_p7), %s867_s7, 64  }
 0x1af   : > { %3068 = vsyncadd (%p4056_p7), %s867_s7, 4294967232  ;;  %s879_s9 = scalar_lea.vmem [#allocation19], %s3667_s10  ;;  %p4064_p5 = pmov %p4063_p0 }
 0x1b0   : > { %p4065_p1 = pmov %p4063_p0 }
 0x1b1   : > { %3070 = dma.done.wait (%p4064_p5), [#allocation21], 32  }
 0x1b2   : > { %3072 = vsyncadd (%p4065_p1), [#allocation21], 4294967264  ;;  %v3112_v0 = vmov 0   ;;  %s4066_s20 = sld [smem:[#allocation43_spill]]  ;;  %s4067_s25 = sld [smem:[#allocation45_spill]]  ;;  %v2549_v8 = vld [vmem:[#allocation8 + $0x40] sm:$0xff]   ;;  %v996_v39 = vlaneseq }
 0x1b3   : > { %1062 = vmatprep.mubr.bf16.mxu0 %v3112_v0  ;;  %v989_v7 = vld [vmem:[%s3645_s16] sm:$0xf]  ;;  %v2550_v9 = vld [vmem:[#allocation8] sm:$0xff]   ;;  %vm1026_vm0 = vcmask 261120   ;;  %v2553_v12 = vld [vmem:[#allocation8 + $0x48] sm:$0xff]   ;;  %v3113_v38 = vmov 0.0  }
 0x1b4   : > { %v2554_v13 = vld [vmem:[#allocation8 + $0x8] sm:$0xff]   ;;  %v2557_v16 = vld [vmem:[#allocation8 + $0x50] sm:$0xff]   ;;  %v2561_v20 = vld [vmem:[#allocation8 + $0x58] sm:$0xff]   ;;  %v997_v40 = vshrl.u32 %v996_v39, 7  ;;  %s4068_s19 = sld [smem:[#allocation50_spill]]  ;;  %s4069_s16 = sld [smem:[#allocation52_spill]] }
 0x1b5   : > { %v2558_v17 = vld [vmem:[#allocation8 + $0x10] sm:$0xff]   ;;  %v2562_v21 = vld [vmem:[#allocation8 + $0x18] sm:$0xff]   ;;  %v2565_v24 = vld [vmem:[#allocation8 + $0x60] sm:$0xff]   ;;  %vm3114_vm3 = vmmov 0   ;;  %s4070_s29 = sld [smem:[#allocation54_spill]]  ;;  %s4072_s3 = sld [smem:[#allocation56_spill]] }
 0x1b6   : > { %v2566_v25 = vld [vmem:[#allocation8 + $0x20] sm:$0xff]   ;;  %v2569_v28 = vld [vmem:[#allocation8 + $0x68] sm:$0xff]   ;;  %v2573_v32 = vld [vmem:[#allocation8 + $0x70] sm:$0xff]   ;;  %v998_v41 = vsub.s32 0, %v997_v40  ;;  %v1002_v43 = vsub.s32 1, %v997_v40  ;;  %p980_p9 = scmp.lt.s32.totalorder %s4057_s4, 1 }
 0x1b7   : > { %v2570_v29 = vld [vmem:[#allocation8 + $0x28] sm:$0xff]   ;;  %v2574_v33 = vld [vmem:[#allocation8 + $0x30] sm:$0xff]   ;;  %v2577_v36 = vld [vmem:[#allocation8 + $0x78] sm:$0xff]   ;;  %s4075_s21 = sld [smem:[#allocation58_spill]]  ;;  %s4077_s2 = sld [smem:[#allocation59_spill]] }
 0x1b8   : > { %v2541_v1 = vld [vmem:[%s4066_s20 + $0x4] ss:$8 sps:$4 sm:$0xff]   ;;  %v2543_v2 = vld [vmem:[%s4066_s20] ss:$8 sps:$4 sm:$0xff]   ;;  %v2544_v3 = vld [vmem:[%s4066_s20 + $0x14] ss:$8 sps:$4 sm:$0xff]  }
 0x1b9   : > { %1030 = vmatprep.subr.bf16.mxu0 %v2541_v1  ;;  %v2546_v4 = vld [vmem:[%s4066_s20 + $0x10] ss:$8 sps:$4 sm:$0xff]   ;;  %v2547_v5 = vld [vmem:[%s4067_s25 + $0x40] sm:$0xff]   ;;  %v2551_v10 = vld [vmem:[%s4067_s25 + $0x48] sm:$0xff]   ;;  %s3841_s15 = scalar_select %p980_p9, %s4057_s4, 1 }
 0x1ba   : > { %1031 = vmatpush1.bf16.msra.mxu0 %v2543_v2  ;;  %v2548_v6 = vld [vmem:[%s4067_s25] sm:$0xff]   ;;  %2260 = vmatprep.subr.bf16.mxu1 %v2547_v5  ;;  %v2552_v11 = vld [vmem:[%s4067_s25 + $0x8] sm:$0xff]   ;;  %v2555_v14 = vld [vmem:[%s4067_s25 + $0x50] sm:$0xff]   ;;  %s4076_s24 = sld [smem:[#allocation40_spill]]  ;;  %s3115_s10 = smov [#allocation23]  }
 0x1bb   : > { %1032 = vmatprep.subr.bf16.mxu0 %v2544_v3  ;;  %2261 = vmatpush3.bf16.msra.mxu1 %v2548_v6  ;;  %v2556_v15 = vld [vmem:[%s4067_s25 + $0x10] sm:$0xff]   ;;  %v2559_v18 = vld [vmem:[%s4067_s25 + $0x58] sm:$0xff]   ;;  %v2563_v22 = vld [vmem:[%s4067_s25 + $0x60] sm:$0xff]   ;;  %s4071_s27 = smov %s4070_s29  ;;  %s4073_s1 = smov %s4072_s3 }
 0x1bc   : > { %2262 = vmatprep.subr.bf16.mxu1 %v2551_v10  ;;  %v2560_v19 = vld [vmem:[%s4067_s25 + $0x18] sm:$0xff]   ;;  %v2564_v23 = vld [vmem:[%s4067_s25 + $0x20] sm:$0xff]   ;;  %v2567_v26 = vld [vmem:[%s4067_s25 + $0x68] sm:$0xff]   ;;  %s2187_s6 = sshll.u32 %s3841_s15, 1 }
 0x1bd   : > { %v2568_v27 = vld [vmem:[%s4067_s25 + $0x28] sm:$0xff]   ;;  %v2571_v30 = vld [vmem:[%s4067_s25 + $0x70] sm:$0xff]   ;;  %v2575_v34 = vld [vmem:[%s4067_s25 + $0x78] sm:$0xff]   ;;  %s987_s23 = scalar_lea.vmem %s4075_s21, %s2187_s6 }
 0x1be   : > { %1033 = vmatpush1.bf16.msra.mxu0 %v2546_v4  ;;  %v2572_v31 = vld [vmem:[%s4067_s25 + $0x30] sm:$0xff]   ;;  %v2576_v35 = vld [vmem:[%s4067_s25 + $0x38] sm:$0xff]   ;;  %v2578_v37 = vld [vmem:[#allocation8 + $0x38] sm:$0xff]  }
 0x1bf   : > { %2282 = vmatprep.subr.bf16.mxu0 %v2549_v8  ;;  %2263 = vmatpush3.bf16.msra.mxu1 %v2552_v11  ;;  %v994_v42 = vld [vmem:[#allocation5] sm:$0x3]  ;;  %v1254_v44 = vld [vmem:[%s3660_s5] sm:$0xf]  ;;  %v2579_v0 = vld [vmem:[%s4068_s19] sm:$0xff]   ;;  %s2255_s5 = sshll.u32 %s4057_s4, 7 }
 0x1c0   : > { %2264 = vmatprep.subr.bf16.mxu1 %v2555_v14  ;;  %v999_v45 = vrot.slane %v994_v42, %v998_v41  ;;  %v1003_v46 = vrot.slane %v994_v42, %v1002_v43  ;;  %v1255_v47 = vunpack.c.0.s8 %v1254_v44  ;;  %v1256_v48 = vunpack.c.1.s8 %v1254_v44  ;;  %v2580_v3 = vld [vmem:[%s4069_s16] sm:$0xff]   ;;  %v2581_v5 = vld [vmem:[%s4068_s19 + $0x8] sm:$0xff]   ;;  %v2584_v8 = vld [vmem:[%s4069_s16 + $0x10] sm:$0xff]   ;;  %p4078_p6 = scmp.ne.s32.totalorder %s4076_s24, 0 }
 0x1c1   : > { %2193 = vmatmul.mubr.msk.bf16.vlgmr.msra.gmra.mrb[0].mxu0 %vm1026_vm0, %v989_v7  ;;  %v2582_v6 = vld [vmem:[%s4069_s16 + $0x8] sm:$0xff]   ;;  %v2583_v7 = vld [vmem:[%s4068_s19 + $0x10] sm:$0xff]   ;;  %v2586_v10 = vld [vmem:[%s4069_s16 + $0x18] sm:$0xff]  }
 0x1c2   : > { %2283 = vmatpush3.bf16.msra.mxu0 %v2550_v9  ;;  %v1257_v54 = vcvt.s32.f32 %v1255_v47  ;;  %v1258_v57 = vcvt.s32.f32 %v1256_v48  ;;  %v2585_v9 = vld [vmem:[%s4068_s19 + $0x18] sm:$0xff]   ;;  %v2587_v11 = vld [vmem:[%s4068_s19 + $0x20] sm:$0xff]   ;;  %v2590_v14 = vld [vmem:[%s4069_s16 + $0x28] sm:$0xff]  }
 0x1c3   : > { %2284 = vmatprep.subr.bf16.mxu0 %v2553_v12  ;;  %2265 = vmatpush3.bf16.msra.mxu1 %v2556_v15  ;;  %v2588_v12 = vld [vmem:[%s4069_s16 + $0x20] sm:$0xff]   ;;  %v2591_v15 = vld [vmem:[%s4068_s19 + $0x30] sm:$0xff]  }
 0x1c4   : > { %2266 = vmatprep.subr.bf16.mxu1 %v2559_v18  ;;  %v2594_v18 = vld [vmem:[%s4069_s16 + $0x38] sm:$0xff]   ;;  %v2595_v47 = vld [vmem:[%s4070_s29] sm:$0xff]  }
 0x1c5   : > { %v2596_v48 = vld [vmem:[%s4072_s3] sm:$0xff]   ;;  %s2186_s3 = sshll.u32 %s3641_s17, 3 }
 0x1c6   : > { %2285 = vmatpush3.bf16.msra.mxu0 %v2554_v13  ;;  %v2589_v13 = vld [vmem:[%s4068_s19 + $0x28] sm:$0xff]   ;;  %s973_s7 = scalar_lea.vmem [#allocation23], %s2186_s3 }
 0x1c7   : > { %2286 = vmatprep.subr.bf16.mxu0 %v2557_v16  ;;  %2267 = vmatpush3.bf16.msra.mxu1 %v2560_v19  ;;  %v2592_v16 = vld [vmem:[%s4069_s16 + $0x30] sm:$0xff]   ;;  %s1853_s13 = sshll.u32 %s973_s7, 4  ;;  %s3865_s13 = int_to_ptr.vmem [resolvable:$true] %s1853_s13 }
 0x1c8   : > { %2268 = vmatprep.subr.bf16.mxu1 %v2563_v22  ;;  %v1259_v19 = vld [vmem:[%s853_s0] sm:$0x3]  ;;  %s3863_s0 = scalar_lea.hbm %s4077_s2, %s2255_s5 }
 0x1ca   : > { %2287 = vmatpush3.bf16.msra.mxu0 %v2558_v17  ;;  %v2593_v17 = vld [vmem:[%s4068_s19 + $0x38] sm:$0xff]  }
 0x1cb   : > { %2288 = vmatprep.subr.bf16.mxu0 %v2561_v20  ;;  %2269 = vmatpush3.bf16.msra.mxu1 %v2564_v23 }
 0x1cc   : > { %2270 = vmatprep.subr.bf16.mxu1 %v2567_v26 }
 0x1ce   : > { %2289 = vmatpush3.bf16.msra.mxu0 %v2562_v21  ;;  %v1260_v21 = vunpack.c.0.s8 %v1259_v19 }
 0x1cf   : > { %2290 = vmatprep.subr.bf16.mxu0 %v2565_v24  ;;  %2271 = vmatpush3.bf16.msra.mxu1 %v2568_v27  ;;  %v2211_v27 = vld [vmem:[#allocation10] ss:$0 sm:$0xff] }
 0x1d0   : > { %2272 = vmatprep.subr.bf16.mxu1 %v2571_v30 }
 0x1d2   : > { %2291 = vmatpush3.bf16.msra.mxu0 %v2566_v25 }
 0x1d3   : > { %2292 = vmatprep.subr.bf16.mxu0 %v2569_v28  ;;  %2273 = vmatpush3.bf16.msra.mxu1 %v2572_v31 }
 0x1d4   : > { %2274 = vmatprep.subr.bf16.mxu1 %v2575_v34 }
 0x1d6   : > { %2293 = vmatpush3.bf16.msra.mxu0 %v2570_v29  ;;  %v1261_v29 = vcvt.s32.f32 %v1260_v21 }
 0x1d7   : > { %2294 = vmatprep.subr.bf16.mxu0 %v2573_v32  ;;  %2275 = vmatpush3.bf16.msra.mxu1 %v2576_v35  ;;  %v1558_v32 = vld [vmem:[%s870_s22] sm:$0x3]  ;;  %s4074_s22 = sld [smem:[#allocation57_spill]] }
 0x1d8   : > { %2328 = vmatprep.subr.bf16.mxu1 %v3113_v38 }
 0x1da   : > { %2295 = vmatpush3.bf16.msra.mxu0 %v2574_v33  ;;  %v2194_v33 = vld [vmem:[#allocation7] ss:$0 sm:$0xff] }
 0x1db   : > { %2296 = vmatprep.subr.bf16.mxu0 %v2577_v36  ;;  %v1559_v36 = vunpack.c.0.s8 %v1558_v32 }
 0x1dd   : > { %v1560_v41 = vcvt.s32.f32 %v1559_v36  ;;  %s983_s29 = scalar_lea.vmem %s4074_s22, %s2187_s6  ;;  %s1836_s22 = scalar_lea.sflag [#allocation4], %s3641_s17 }
 0x1de   : > { %2297 = vmatpush3.bf16.msra.mxu0 %v2578_v37 }
 0x1df   : > { %2348 = vmatprep.subr.bf16.mxu0 %v3113_v38 }
 0x294   : > { %v1064_v49 = vpop.f32.mrb[0].mxu0 }
 0x295   : > { %v1065_v50 = vadd.f32 %v1064_v49, %v999_v45  ;;  %v1066_v51 = vpop.f32.mrb[1].mxu0  ;;  %v2597_v49 = vld [vmem:[%s4071_s27 + $0x8] sm:$0xff]  }
 0x296   : > { %v1067_v52 = vadd.f32 %v1066_v51, %v1003_v46  ;;  %v1068_v53 = vpop.f32.mrb[2].mxu0  ;;  %v1561_v51 = vld [vmem:[%s879_s9] sm:$0x3]  ;;  %s2977_s9 = sshll.u32 %s3115_s10, 4  ;;  %s2978_s9 = int_to_ptr.vmem [resolvable:$false] %s2977_s9 }
 0x297   : > { %vm1071_vm1 = vcmp.ge.f32.partialorder %v1065_v50, 0.0  ;;  %v1073_v55 = vmul.f32 0.01, %v1065_v50  ;;  %v1069_v56 = vpop.f32.mrb[3].mxu0  ;;  %v2237_v53 = vld [vmem:[#allocation16] ss:$0 sm:$0xff]  ;;  %p2980_p7 = scmp.lt.s32.totalorder %s3865_s13, %s2978_s9 }
 0x298   : > { %v1074_v58 = vmul.f32 0.01, %v1067_v52  ;;  %vm1072_vm2 = vcmp.ge.f32.partialorder %v1067_v52, 0.0  ;;  %v1749_v56 = vld [vmem:[%s983_s29] sm:$0x3]  ;;  %s2973_s29 = scalar_lea.vmem %s3865_s13, 128 }
 0x299   : > { %v1075_v59 = vsel %vm1071_vm1, %v1065_v50, %v1073_v55  ;;  %v2598_v50 = vld [vmem:[%s4073_s1 + $0x8] sm:$0xff]   ;;  %p2974_p12 = scmp.ne.s32.totalorder %s3865_s13, %s2973_s29  ;;  %s2979_s21 = scalar_lea.vmem %s2978_s9, 256 }
 0x29a   : > { %v1076_v60 = vsel %vm1072_vm2, %v1067_v52, %v1074_v58  ;;  %v1262_v61 = vmul.f32 %v1257_v54, %v1075_v59  ;;  %v1077_v1 = vpack.c.bf16 %v1075_v59, %v1075_v59  ;;  %v1562_v52 = vunpack.c.0.s8 %v1561_v51  ;;  %p2981_p10 = scmp.lt.s32.totalorder %s2979_s21, %s2973_s29 }
 0x29b   : > { %v1078_v62 = vpack.c.bf16 %v1076_v60, %v1076_v60  ;;  %v1263_v63 = vmul.f32 %v1258_v57, %v1076_v60  ;;  %v2228_v57 = vld [vmem:[#allocation14] ss:$0 sm:$0xff]  ;;  %p2975_p8 = pnand %p2974_p12, %p4078_p6 }
 0x29c   : > { %v1264_v4 = vpack.c.bf16 %v1262_v61, %v1262_v61  ;;  %v1563_v55 = vcvt.s32.f32 %v1562_v52  ;;  %p2982_p2 = por %p2981_p10, %p2980_p7 }
 0x29d   : > { %1246 = vmatprep.mubr.bf16.mxu1 %v1078_v62  ;;  %v1265_v2 = vpack.c.bf16 %v1263_v63, %v1263_v63  ;;  %v1750_v63 = vunpack.c.0.s8 %v1749_v56  ;;  %p2976_p3 = pneg %p2975_p8 }
 0x29e   : > { %1247 = vmatmul.mubr.bf16.vlgmr.msra.gmra.mrb[0].mxu1 %v1077_v1 }
 0x29f   : > { %1433 = vmatprep.mubr.bf16.mxu0 %v1265_v2  ;;  %2329 = vmatpush3.bf16.msra.mxu1 %v2579_v0  ;;  %p2983_p11 = pnand %p2982_p2, %p2976_p3 }
 0x2a0   : > { %1434 = vmatmul.mubr.bf16.vlgmr.msra.gmra.mrb[4].mxu0 %v1264_v4  ;;  %2330 = vmatprep.subr.bf16.mxu1 %v3113_v38 }
 0x2a1   : > { %2349 = vmatpush3.bf16.msra.mxu0 %v2580_v3  ;;  %2344 = vmatprep.mubr.msk.bf16.mxu1 %vm3114_vm3, %v3113_v38 }
 0x2a2   : > { %2350 = vmatprep.subr.bf16.mxu0 %v3113_v38  ;;  %2364 = vmatprep.mubr.msk.bf16.mxu0 %vm3114_vm3, %v3113_v38 }
 0x2a3   : > { %2331 = vmatpush3.bf16.msra.mxu1 %v2581_v5  ;;  %v1751_v5 = vcvt.s32.f32 %v1750_v63 }
 0x2a4   : > { %2332 = vmatprep.subr.bf16.mxu1 %v3113_v38 }
 0x2a5   : > { %2351 = vmatpush3.bf16.msra.mxu0 %v2582_v6 }
 0x2a6   : > { %2352 = vmatprep.subr.bf16.mxu0 %v3113_v38 }
 0x2a7   : > { %2333 = vmatpush3.bf16.msra.mxu1 %v2583_v7 }
 0x2a8   : > { %2334 = vmatprep.subr.bf16.mxu1 %v3113_v38 }
 0x2a9   : > { %2353 = vmatpush3.bf16.msra.mxu0 %v2584_v8 }
 0x2aa   : > { %2354 = vmatprep.subr.bf16.mxu0 %v3113_v38 }
 0x2ab   : > { %2335 = vmatpush3.bf16.msra.mxu1 %v2585_v9 }
 0x2ac   : > { %2336 = vmatprep.subr.bf16.mxu1 %v3113_v38 }
 0x2ad   : > { %2355 = vmatpush3.bf16.msra.mxu0 %v2586_v10 }
 0x2ae   : > { %2356 = vmatprep.subr.bf16.mxu0 %v3113_v38 }
 0x2af   : > { %2337 = vmatpush3.bf16.msra.mxu1 %v2587_v11  ;;  %v1752_v11 = vld [vmem:[%s987_s23] sm:$0x3] }
 0x2b0   : > { %2338 = vmatprep.subr.bf16.mxu1 %v3113_v38 }
 0x2b1   : > { %2357 = vmatpush3.bf16.msra.mxu0 %v2588_v12  ;;  %v1753_v12 = vunpack.c.0.s8 %v1752_v11 }
 0x2b2   : > { %2358 = vmatprep.subr.bf16.mxu0 %v3113_v38 }
 0x2b3   : > { %2339 = vmatpush3.bf16.msra.mxu1 %v2589_v13 }
 0x2b4   : > { %2340 = vmatprep.subr.bf16.mxu1 %v3113_v38 }
 0x2b5   : > { %2359 = vmatpush3.bf16.msra.mxu0 %v2590_v14  ;;  %v2250_v14 = vld [vmem:[#allocation22] ss:$0 sm:$0xff] }
 0x2b6   : > { %2360 = vmatprep.subr.bf16.mxu0 %v3113_v38 }
 0x2b7   : > { %2341 = vmatpush3.bf16.msra.mxu1 %v2591_v15 }
 0x2b8   : > { %2342 = vmatprep.subr.bf16.mxu1 %v3113_v38 }
 0x2b9   : > { %2361 = vmatpush3.bf16.msra.mxu0 %v2592_v16  ;;  %v1754_v16 = vcvt.s32.f32 %v1753_v12 }
 0x2ba   : > { %2362 = vmatprep.subr.bf16.mxu0 %v3113_v38 }
 0x2bb   : > { %2343 = vmatpush3.bf16.msra.mxu1 %v2593_v17  ;;  %v2246_v17 = vld [vmem:[#allocation20] ss:$0 sm:$0xff] }
 0x2bc   : > { %2368 = vmatprep.subr.bf16.mxu1 %v3113_v38 }
 0x2bd   : > { %2363 = vmatpush3.bf16.msra.mxu0 %v2594_v18 }
 0x2be   : > { %2376 = vmatprep.subr.bf16.mxu0 %v3113_v38 }
 0x371   : > { %v2276_v20 = vpop.f32.mrb[0].mxu1 }
 0x372   : > { %v2277_v22 = vpop.f32.mrb[1].mxu1 }
 0x373   : > { %v2278_v23 = vadd.f32 %v2277_v22, %v2276_v20  ;;  %v2279_v24 = vpop.f32.mrb[2].mxu1  ;;  %v2298_v25 = vpop.f32.mrb[4].mxu0 }
 0x374   : > { %v2280_v26 = vpop.f32.mrb[3].mxu1  ;;  %v2299_v28 = vpop.f32.mrb[5].mxu0 }
 0x375   : > { %v2300_v30 = vadd.f32 %v2299_v28, %v2298_v25  ;;  %v2301_v31 = vpop.f32.mrb[6].mxu0  ;;  %v1249_v37 = vadd.f32 %v2278_v23, %v2194_v33 }
 0x376   : > { %v2302_v34 = vpop.f32.mrb[7].mxu0 }
 0x377   : > { %v1436_v35 = vadd.f32 %v2300_v30, %v2211_v27 }
 0x379   : > { %v1441_v39 = vmul.f32 %v1436_v35, %v1261_v29 }
 0x37b   : > { %v1442_v40 = vadd.f32 %v1441_v39, %v1249_v37 }
 0x37d   : > { %v1444_v42 = vmul.f32 0.01, %v1442_v40  ;;  %vm1443_vm4 = vcmp.ge.f32.partialorder %v1442_v40, 0.0 }
 0x37f   : > { %v1445_v43 = vsel %vm1443_vm4, %v1442_v40, %v1444_v42 }
 0x380   : > { %v1446_v44 = vpack.c.bf16 %v1445_v43, %v1445_v43  ;;  %v1564_v45 = vmul.f32 %v1560_v41, %v1445_v43 }
 0x382   : > { %2345 = vmatmul.mubr.bf16.vlgmr.msra.gmra.mrb[4].mxu1 %v1446_v44  ;;  %v1565_v46 = vpack.c.bf16 %v1564_v45, %v1564_v45 }
 0x383   : > { %2372 = vmatprep.mubr.msk.bf16.mxu1 %vm3114_vm3, %v3113_v38  ;;  %2369 = vmatpush3.bf16.msra.mxu1 %v2595_v47 }
 0x384   : > { %2365 = vmatmul.mubr.bf16.vlgmr.msra.gmra.mrb[8].mxu0 %v1565_v46  ;;  %2370 = vmatprep.subr.bf16.mxu1 %v3113_v38 }
 0x385   : > { %2380 = vmatprep.mubr.msk.bf16.mxu0 %vm3114_vm3, %v3113_v38  ;;  %2377 = vmatpush3.bf16.msra.mxu0 %v2596_v48 }
 0x386   : > { %2378 = vmatprep.subr.bf16.mxu0 %v3113_v38 }
 0x387   : > { %2371 = vmatpush3.bf16.msra.mxu1 %v2597_v49 }
 0x389   : > { %2379 = vmatpush3.bf16.msra.mxu0 %v2598_v50 }
 0x455   : > { %v1552_v38 = vpop.f32.mrb[4].mxu1 }
 0x456   : > { %v2346_v54 = vpop.f32.mrb[5].mxu1  ;;  %v1553_v1 = vadd.f32 %v2228_v57, %v1552_v38 }
 0x457   : > { %v1555_v58 = vpop.f32.mrb[6].mxu1  ;;  %v1671_v59 = vpop.f32.mrb[8].mxu0 }
 0x458   : > { %v1672_v60 = vadd.f32 %v2237_v53, %v1671_v59  ;;  %v2347_v61 = vpop.f32.mrb[7].mxu1  ;;  %v2366_v62 = vpop.f32.mrb[9].mxu0 }
 0x459   : > { %v1674_v0 = vpop.f32.mrb[10].mxu0 }
 0x45a   : > { %v1677_v2 = vmul.f32 %v1672_v60, %v1563_v55  ;;  %v2367_v3 = vpop.f32.mrb[11].mxu0 }
 0x45c   : > { %v1678_v4 = vadd.f32 %v1677_v2, %v1553_v1 }
 0x45e   : > { %vm1679_vm5 = vcmp.ge.f32.partialorder %v1678_v4, 0.0  ;;  %v1680_v6 = vmul.f32 0.01, %v1678_v4 }
 0x460   : > { %v1681_v7 = vsel %vm1679_vm5, %v1678_v4, %v1680_v6 }
 0x461   : > { %v1682_v8 = vpack.c.bf16 %v1681_v7, %v1681_v7  ;;  %v1755_v9 = vmul.f32 %v1751_v5, %v1681_v7 }
 0x463   : > { %v1756_v10 = vpack.c.bf16 %v1755_v9, %v1755_v9  ;;  %2373 = vmatmul.mubr.msk.bf16.vlgmr.msra.gmra.mrb[8].mxu1 %vm1026_vm0, %v1682_v8 }
 0x465   : > { %2381 = vmatmul.mubr.msk.bf16.vlgmr.msra.gmra.mrb[12].mxu0 %vm1026_vm0, %v1756_v10 }
 0x536   : > { %v1743_v13 = vpop.f32.mrb[8].mxu1 }
 0x537   : > { %v2374_v15 = vpop.f32.mrb[9].mxu1  ;;  %v1744_v24 = vadd.f32 %v2246_v17, %v1743_v13 }
 0x538   : > { %v1746_v18 = vpop.f32.mrb[10].mxu1  ;;  %v1817_v19 = vpop.f32.mrb[12].mxu0 }
 0x539   : > { %v1818_v20 = vadd.f32 %v2250_v14, %v1817_v19  ;;  %v2375_v21 = vpop.f32.mrb[11].mxu1  ;;  %v2382_v22 = vpop.f32.mrb[13].mxu0 }
 0x53a   : > { %v1820_v23 = vpop.f32.mrb[14].mxu0 }
 0x53b   : > { %v1823_v25 = vmul.f32 %v1818_v20, %v1754_v16  ;;  %v2383_v26 = vpop.f32.mrb[15].mxu0 }
 0x53d   : > { %v1824_v27 = vadd.f32 %v1823_v25, %v1744_v24 }
 0x53f   : > { %v1826_v28 = vrot.slane %v1824_v27, 4  ;;  %1825 = vst [vmem:[%s973_s7] sm:$0xff] %v1824_v27 }
 0x540   : > { %2986 = shalt.err (!%p2983_p11)
}
 0x541   : > { %s2987_s23 = scalar_lea.hbm %s3863_s0, 128  ;;  %s2991_s7 = scalar_lea.hbm %s4077_s2, 256 }
 0x542   : > { %p2988_p4 = scmp.ne.s32.totalorder %s3863_s0, %s2987_s23  ;;  %p2992_p5 = scmp.lt.u32.totalorder %s3863_s0, %s4077_s2 }
 0x543   : > { %p2993_p1 = scmp.lt.u32.totalorder %s2991_s7, %s2987_s23  ;;  %p2995_p12 = scmp.lt.u32.totalorder %s2987_s23, %s3863_s0 }
 0x544   : > { %p2989_p13 = pnand %p2988_p4, %p4078_p6 }
 0x545   : > { %p2994_p9 = por %p2993_p1, %p2992_p5 }
 0x546   : > { %p2990_p0 = pneg %p2989_p13 }
 0x547   : > { %p2996_p8 = por %p2995_p12, %p2994_p9 }
 0x549   : > { %p2997_p3 = pnand %p2996_p8, %p2990_p0 }
 0x54b   : > { %3000 = shalt.err (!%p2997_p3)
}
 0x54c   : > { %2426 = dma.vmem_to_hbm [thread:$0]  (%p4078_p6), %s3865_s13, 128, %s3863_s0, %s1836_s22   ;;  %v1827_v29 = vadd.f32 %v1826_v28, %v1824_v27 }
 0x54d   : > { %s2256_s29 = sshll.u32 %s4057_s4, 4  ;;  %s979_s10 = scalar_lea.vmem [#allocation24], %s3641_s17 }
 0x54e   : > { %v1828_v30 = vrot.slane %v1827_v29, 2  ;;  %s1866_s9 = sshll.u32 %s979_s10, 4  ;;  %s4079_s3 = sld [smem:[#allocation60_spill]]  ;;  %s3896_s9 = int_to_ptr.vmem [resolvable:$true] %s1866_s9 }
 0x54f   : > { %s1841_s13 = scalar_lea.sflag [#allocation25], %s3641_s17  ;;  %s3001_s0 = scalar_lea.vmem %s3896_s9, 16 }
 0x550   : > { %v1829_v31 = vadd.f32 %v1828_v30, %v1827_v29  ;;  %p3002_p7 = scmp.ne.s32.totalorder %s3896_s9, %s3001_s0  ;;  %s3116_s4 = smov [#allocation24]  }
 0x551   : > { %s3005_s22 = sshll.u32 %s3116_s4, 4  ;;  %s3006_s22 = int_to_ptr.vmem [resolvable:$false] %s3005_s22 }
 0x552   : > { %v1830_v32 = vrot.slane %v1829_v31, 1  ;;  %p3003_p10 = pnand %p3002_p7, %p4078_p6  ;;  %s3007_s15 = scalar_lea.vmem %s3006_s22, 32 }
 0x553   : > { %p3008_p11 = scmp.lt.s32.totalorder %s3896_s9, %s3006_s22  ;;  %p3009_p4 = scmp.lt.s32.totalorder %s3007_s15, %s3001_s0 }
 0x554   : > { %v1831_v33 = vadd.f32 %v1830_v32, %v1829_v31  ;;  %s4080_s5 = smov %s4079_s3  ;;  %s3894_s7 = scalar_lea.hbm %s4079_s3, %s2256_s29 }
 0x555   : > { %p3004_p2 = pneg %p3003_p10  ;;  %p3010_p13 = por %p3009_p4, %p3008_p11 }
 0x556   : > { %v1833_v34 = vmul.f32 0.125, %v1831_v33 }
 0x557   : > { %p3011_p0 = pnand %p3010_p13, %p3004_p2 }
 0x558   : > { %1834 = vst [vmem:[%s979_s10] sm:$0x1] %v1833_v34 }
 0x559   : > { %3014 = shalt.err (!%p3011_p0)
}
 0x55a   : > { %s3015_s17 = scalar_lea.hbm %s3894_s7, 16  ;;  %s3019_s10 = scalar_lea.hbm %s4080_s5, 32 }
 0x55b   : > { %p3016_p5 = scmp.ne.s32.totalorder %s3894_s7, %s3015_s17  ;;  %p3020_p12 = scmp.lt.u32.totalorder %s3894_s7, %s4080_s5 }
 0x55c   : > { %p3021_p8 = scmp.lt.u32.totalorder %s3019_s10, %s3015_s17  ;;  %p3023_p7 = scmp.lt.u32.totalorder %s3015_s17, %s3894_s7 }
 0x55d   : > { %p3017_p1 = pnand %p3016_p5, %p4078_p6 }
 0x55e   : > { %p3022_p3 = por %p3021_p8, %p3020_p12 }
 0x55f   : > { %p3018_p9 = pneg %p3017_p1 }
 0x560   : > { %p3024_p10 = por %p3023_p7, %p3022_p3 }
 0x562   : > { %p3025_p2 = pnand %p3024_p10, %p3018_p9 }
 0x564   : > { %3028 = shalt.err (!%p3025_p2)
}
 0x565   : > { %2427 = dma.vmem_to_hbm [thread:$0]  (%p4078_p6), %s3896_s9, 16, %s3894_s7, %s1841_s13  }
 0x566 PF: > { %s4081_s3 = sld [smem:[#allocation35_spill]]  ;;  %s4082_s0 = sld [smem:[#allocation41_spill]] }
 0x567   : > { %p4084_p4 = scmp.ge.s32.totalorder %s3095_s30, 2 }
 0x56c   : > { %s1878_s4 = sand.u32 1, %s4081_s3   ;;  %p4083_p11 = scmp.ne.s32.totalorder %s4082_s0, 0 }
 0x56d   : > { %s1879_s22 = scalar_lea.sflag [#allocation4], %s1878_s4 }
 0x56e   : > { %p2472_p13 = pnand %p4084_p4, %p4083_p11 }
 0x570   : > { %3074 = dma.done.wait (!%p2472_p13), %s1879_s22, 128  }
 0x571   : > { %3076 = vsyncadd (!%p2472_p13), %s1879_s22, 4294967168  ;;  %s1888_s15 = scalar_lea.sflag [#allocation25], %s1878_s4 }
 0x572   : > { %3078 = dma.done.wait (!%p2472_p13), %s1888_s15, 16  }
 0x573   : > { %3080 = vsyncadd (!%p2472_p13), %s1888_s15, 4294967280  ;;  %s4085_s30 = sld [smem:[#allocation38_spill]]  ;;  %s4086_s24 = sld [smem:[#allocation36_spill]] }
 0x574   : > { %s4087_s29 = sld [smem:[#allocation39_spill]]  ;;  %s4088_s3 = smov %s3087_s28 }
 0x579   : > { %p49_p6 = scmp.ge.s32.totalorder %s4085_s30, 4   ;;  %s4089_s28 = smov %s4086_s24 }
 0x57b   :  { %51 = sbr.rel (!%p49_p6) target bundleno = 35 (0x23), region = 252 }
 0x582   :  { %1892 = vsyncpa [#allocation3], 1 }
 0x583   :  { %1894 = vsyncpa [#allocation3 + $0x1], 1 }
 0x584   :  { %1895 = vsyncpa [#allocation6], 1 }
 0x585   :  { %1896 = vsyncpa [#allocation9], 1 }
 0x586   :  { %1897 = vsyncpa [#allocation12], 1 }
 0x587   :  { %1899 = vsyncpa [#allocation12 + $0x1], 1 }
 0x588   :  { %1900 = vsyncpa [#allocation15], 1 }
 0x589   :  { %1901 = vsyncpa [#allocation18], 1 }
 0x58a   :  { %1903 = vsyncpa [#allocation18 + $0x1], 1 }
 0x58b   :  { %1904 = vsyncpa [#allocation21], 1 }
 0x58c   :  { %1905 = vsyncpa [#allocation4], 1 }
 0x58d   :  { %1907 = vsyncpa [#allocation4 + $0x1], 1 }
 0x58e   :  { %1908 = vsyncpa [#allocation25], 1 }
 0x58f   :  { %1910 = vsyncpa [#allocation25 + $0x1], 1 }

</bundles_post_ra>
